<compile_context>
chip_gen: v7x
topology: tpu7x:2x2x1
jax: 0.10.0
libtpu: 0.0.40
codegen_flags: <defaults>
</compile_context>

<pallas_src>
import math
import functools

import jax
import jax.numpy as jnp
from jax.experimental import pallas as pl
from jax.experimental.pallas import tpu as pltpu


# ------------------------------------------------------------------ in-kernel helpers

def _matmul_pt(x2d, w):
    """x2d: (M, K) f32, w: (N, K) PyTorch (Dout, Din) layout.  Returns (M, N) f32.
    bf16 MXU operands with f32 accumulation; no transpose materialized."""
    return jax.lax.dot_general(
        x2d.astype(jnp.bfloat16), w.astype(jnp.bfloat16),
        dimension_numbers=(((1,), (1,)), ((), ())),
        preferred_element_type=jnp.float32)


def _add_layernorm(x, r, g, b, eps):
    """Fused residual add + LayerNorm over (L, D) per batch element with
    torch.var (unbiased, /(n-1)) semantics.  x, r: (B, L, D); g, b: (L, D)."""
    s = x + r
    n = float(s.shape[1] * s.shape[2])
    tot = jnp.sum(jnp.sum(s, axis=2, keepdims=True), axis=1, keepdims=True)
    mu = tot / n
    d = s - mu
    ssq = jnp.sum(jnp.sum(d * d, axis=2, keepdims=True), axis=1, keepdims=True)
    var = ssq / (n - 1.0)
    inv = jax.lax.rsqrt(var + eps)
    return d * inv * g[None] + b[None]


# ------------------------------------------------------------------ fused stack kernel

def _encoder_stack_kernel(x_ref, wqkv_ref, wo_ref, w1_ref, w2_ref,
                          g1_ref, b1_ref, g2_ref, b2_ref,
                          o_ref, carry_ref, *, n_head, eps):
    """One grid step == one encoder layer.  Activations persist in carry_ref
    (VMEM scratch) across the whole stack; only the final layer writes o_ref."""
    layer = pl.program_id(0)

    @pl.when(layer == 0)
    def _():
        carry_ref[...] = x_ref[...].astype(jnp.float32)

    x = carry_ref[...]                                   # (B, L, D) f32
    B, L, D = x.shape
    dh = D // n_head
    scale = 1.0 / math.sqrt(dh)

    # ---- fused Q/K/V projection: one MXU matmul over all B*L rows ----
    qkv = _matmul_pt(x.reshape(B * L, D), wqkv_ref[...]).reshape(B, L, 3 * D)
    q = qkv[:, :, :D] * scale                            # fold 1/sqrt(dh) into q
    k = qkv[:, :, D:2 * D]
    v = qkv[:, :, 2 * D:]

    # ---- multi-head self-attention (static unroll over batch, heads batched) ----
    outs = []
    for bix in range(B):
        qh = jnp.transpose(q[bix].reshape(L, n_head, dh), (1, 0, 2)).astype(jnp.bfloat16)
        kh = jnp.transpose(k[bix].reshape(L, n_head, dh), (1, 0, 2)).astype(jnp.bfloat16)
        vh = jnp.transpose(v[bix].reshape(L, n_head, dh), (1, 0, 2)).astype(jnp.bfloat16)
        s = jnp.einsum('hqd,hkd->hqk', qh, kh,
                       preferred_element_type=jnp.float32)          # (H, L, L)
        m = jnp.max(s, axis=-1, keepdims=True)
        p = jnp.exp(s - m)
        p = p * pl.reciprocal(jnp.sum(p, axis=-1, keepdims=True), approx=True)
        o = jnp.einsum('hqk,hkd->hqd', p.astype(jnp.bfloat16), vh,
                       preferred_element_type=jnp.float32)          # (H, L, dh)
        outs.append(jnp.transpose(o, (1, 0, 2)).reshape(L, D))
    attn = jnp.stack(outs, axis=0)                       # (B, L, D)

    # ---- output projection + residual + LayerNorm 1 ----
    a = _matmul_pt(attn.reshape(B * L, D), wo_ref[...]).reshape(B, L, D)
    a = _add_layernorm(x, a, g1_ref[...], b1_ref[...], eps)

    # ---- feed-forward (W1 -> ReLU -> W2) + residual + LayerNorm 2 ----
    h = jnp.maximum(_matmul_pt(a.reshape(B * L, D), w1_ref[...]), 0.0)
    h = _matmul_pt(h, w2_ref[...]).reshape(B, L, D)
    y = _add_layernorm(a, h, g2_ref[...], b2_ref[...], eps)

    carry_ref[...] = y

    @pl.when(layer == pl.num_programs(0) - 1)
    def _():
        o_ref[...] = y.astype(o_ref.dtype)


# ------------------------------------------------------------------ model glue

def positional_encoding(x):
    b, n, d = x.shape
    positions = jnp.arange(n, dtype=jnp.float32) + 1.0
    factors = jnp.exp(jnp.arange(0, d, 2, dtype=jnp.float32) / d * (-math.log(10000.0)))
    terms = jnp.outer(positions, factors)
    p = jnp.zeros((n, d), dtype=x.dtype)
    p = p.at[:, 0::2].set(jnp.sin(terms))
    p = p.at[:, 1::2].set(jnp.cos(terms))
    return x + p[None]


def encoder_stack_forward(params, x, n_head, eps=1e-5):
    """params: dict of per-layer-stacked weights (leading axis = n_layer)."""
    # TODO(synk): nn.Dropout treated as identity (eval-mode).
    x = positional_encoding(x)
    B, L, D = x.shape
    n_layer = params["Wqkv"].shape[0]

    full = lambda l: (0, 0, 0)        # resident across all layers
    per_layer = lambda l: (l, 0, 0)   # streamed (double-buffered) per layer

    return pl.pallas_call(
        functools.partial(_encoder_stack_kernel, n_head=n_head, eps=eps),
        grid=(n_layer,),
        in_specs=[
            pl.BlockSpec((B, L, D), full),                 # x (post positional encoding)
            pl.BlockSpec((None, 3 * D, D), per_layer),     # Wqkv
            pl.BlockSpec((None, D, D), per_layer),         # Wo
            pl.BlockSpec((None, 4 * D, D), per_layer),     # W1
            pl.BlockSpec((None, D, 4 * D), per_layer),     # W2
            pl.BlockSpec((None, L, D), per_layer),         # nrm1 gain
            pl.BlockSpec((None, L, D), per_layer),         # nrm1 bias
            pl.BlockSpec((None, L, D), per_layer),         # nrm2 gain
            pl.BlockSpec((None, L, D), per_layer),         # nrm2 bias
        ],
        out_specs=pl.BlockSpec((B, L, D), full),
        out_shape=jax.ShapeDtypeStruct((B, L, D), x.dtype),
        scratch_shapes=[pltpu.VMEM((B, L, D), jnp.float32)],   # activation carry
        compiler_params=pltpu.CompilerParams(
            dimension_semantics=("arbitrary",)),               # sequential carry over layers
    )(x, params["Wqkv"], params["Wo"], params["W1"], params["W2"],
      params["nrm1_g"], params["nrm1_b"], params["nrm2_g"], params["nrm2_b"])


# ------------------------------------------------------------------ params

def init_params(key, cfg):
    D, L, n_layer = cfg["D"], cfg["L"], cfg["n_layer"]
    ks = jax.random.split(key, 4 * n_layer)

    def dense(k, out_f, in_f):
        return jax.random.normal(k, (out_f, in_f), jnp.float32) * 0.02

    return {
        "Wqkv": jnp.stack([dense(ks[4 * i + 0], 3 * D, D) for i in range(n_layer)]),
        "Wo":   jnp.stack([dense(ks[4 * i + 1], D, D) for i in range(n_layer)]),
        "W1":   jnp.stack([dense(ks[4 * i + 2], 4 * D, D) for i in range(n_layer)]),
        "W2":   jnp.stack([dense(ks[4 * i + 3], D, 4 * D) for i in range(n_layer)]),
        "nrm1_g": jnp.ones((n_layer, L, D), jnp.float32),
        "nrm1_b": jnp.zeros((n_layer, L, D), jnp.float32),
        "nrm2_g": jnp.ones((n_layer, L, D), jnp.float32),
        "nrm2_b": jnp.zeros((n_layer, L, D), jnp.float32),
    }


# ------------------------------------------------------------------ pure-JAX reference

def _reference_forward(params, x, n_head):
    def ln(s, g, b, eps=1e-5):
        n = s.shape[1] * s.shape[2]
        mu = jnp.mean(s, axis=(1, 2), keepdims=True)
        var = jnp.sum((s - mu) ** 2, axis=(1, 2), keepdims=True) / (n - 1)
        return (s - mu) / jnp.sqrt(var + eps) * g[None] + b[None]

    x = positional_encoding(x)
    n_layer = params["Wqkv"].shape[0]
    for i in range(n_layer):
        B, L, D = x.shape
        dh = D // n_head
        qkv = x @ params["Wqkv"][i].T
        q, k, v = jnp.split(qkv, 3, axis=-1)
        q = q.reshape(B, L, n_head, dh).transpose(0, 2, 1, 3)
        k = k.reshape(B, L, n_head, dh).transpose(0, 2, 1, 3)
        v = v.reshape(B, L, n_head, dh).transpose(0, 2, 1, 3)
        s = (q @ jnp.swapaxes(k, -1, -2)) / math.sqrt(dh)
        a = jax.nn.softmax(s, axis=-1) @ v
        a = a.transpose(0, 2, 1, 3).reshape(B, L, D)
        a = ln(x + a @ params["Wo"][i].T, params["nrm1_g"][i], params["nrm1_b"][i])
        h = jnp.maximum(a @ params["W1"][i].T, 0.0) @ params["W2"][i].T
        x = ln(a + h, params["nrm2_g"][i], params["nrm2_b"][i])
    return x


# ------------------------------------------------------------------ main

if __name__ == "__main__":
    cfg = {"D": 32, "L": 8, "n_head": 4, "n_layer": 2, "dropout": 0.0}
    B = 2

    key = jax.random.PRNGKey(0)
    k_p, k_x = jax.random.split(key)

    params = init_params(k_p, cfg)
    x = jax.random.normal(k_x, (B, cfg["L"], cfg["D"]), jnp.float32)

    out = encoder_stack_forward(params, x, cfg["n_head"])
    jax.block_until_ready(out)

    assert out.shape == (B, cfg["L"], cfg["D"])
    assert bool(jnp.all(jnp.isfinite(out)))

    # loose tolerance: kernel runs MXU matmuls in bf16 with f32 accumulation
    ref = _reference_forward(params, x, cfg["n_head"])
    assert bool(jnp.max(jnp.abs(out - ref)) < 0.15)

    print("KERNEL_OK")
</pallas_src>

<mosaic_0001>
module attributes {stable_mosaic.version = 11 : i64} {
  func.func @_encoder_stack_kernel(%arg0: i32, %arg1: memref<2x8x32xf32, #tpu.memory_space<vmem>>, %arg2: memref<1x96x32xf32, #tpu.memory_space<vmem>>, %arg3: memref<1x32x32xf32, #tpu.memory_space<vmem>>, %arg4: memref<1x128x32xf32, #tpu.memory_space<vmem>>, %arg5: memref<1x32x128xf32, #tpu.memory_space<vmem>>, %arg6: memref<1x8x32xf32, #tpu.memory_space<vmem>>, %arg7: memref<1x8x32xf32, #tpu.memory_space<vmem>>, %arg8: memref<1x8x32xf32, #tpu.memory_space<vmem>>, %arg9: memref<1x8x32xf32, #tpu.memory_space<vmem>>, %arg10: memref<2x8x32xf32, #tpu.memory_space<vmem>>, %arg11: memref<2x8x32xf32, #tpu.memory_space<vmem>>) attributes {dimension_semantics = [#tpu.dimension_semantics<arbitrary>], iteration_bounds = array<i64: 2>, scalar_prefetch = 0 : i64, scratch_operands = 1 : i64, tpu.core_type = #tpu.core_type<tc>, window_params = [{pipeline_mode = #tpu.pipeline_mode<synchronous>, transform_indices = @transform_0, window_bounds = array<i64: 2, 8, 32>}, {transform_indices = @transform_1, window_bounds = array<i64: 1, 96, 32>}, {transform_indices = @transform_2, window_bounds = array<i64: 1, 32, 32>}, {transform_indices = @transform_3, window_bounds = array<i64: 1, 128, 32>}, {transform_indices = @transform_4, window_bounds = array<i64: 1, 32, 128>}, {transform_indices = @transform_5, window_bounds = array<i64: 1, 8, 32>}, {transform_indices = @transform_6, window_bounds = array<i64: 1, 8, 32>}, {transform_indices = @transform_7, window_bounds = array<i64: 1, 8, 32>}, {transform_indices = @transform_8, window_bounds = array<i64: 1, 8, 32>}, {pipeline_mode = #tpu.pipeline_mode<synchronous>, transform_indices = @transform_9, window_bounds = array<i64: 2, 8, 32>}]} {
    %c0_i32 = arith.constant 0 : i32
    %0 = arith.cmpi eq, %arg0, %c0_i32 : i32
    %1 = arith.extui %0 : i1 to i32
    %c0_i32_0 = arith.constant 0 : i32
    %2 = arith.cmpi ne, %1, %c0_i32_0 : i32
    scf.if %2 {
      %c0_58 = arith.constant 0 : index
      %c0_59 = arith.constant 0 : index
      %c0_60 = arith.constant 0 : index
      %166 = vector.load %arg1[%c0_58, %c0_59, %c0_60] : memref<2x8x32xf32, #tpu.memory_space<vmem>>, vector<2x8x32xf32>
      %c0_61 = arith.constant 0 : index
      %c0_62 = arith.constant 0 : index
      %c0_63 = arith.constant 0 : index
      %167 = vector.load %arg11[%c0_61, %c0_62, %c0_63] : memref<2x8x32xf32, #tpu.memory_space<vmem>>, vector<2x8x32xf32>
      tpu.vector_store %arg11[%c0_61, %c0_62, %c0_63], %166 {strides = array<i32>} : memref<2x8x32xf32, #tpu.memory_space<vmem>>, vector<2x8x32xf32>,
    } else {
    }
    %c0 = arith.constant 0 : index
    %c0_1 = arith.constant 0 : index
    %c0_2 = arith.constant 0 : index
    %3 = vector.load %arg11[%c0, %c0_1, %c0_2] : memref<2x8x32xf32, #tpu.memory_space<vmem>>, vector<2x8x32xf32>
    %4 = vector.shape_cast %3 : vector<2x8x32xf32> to vector<16x32xf32>
    %c0_3 = arith.constant 0 : index
    %c0_4 = arith.constant 0 : index
    %c0_5 = arith.constant 0 : index
    %5 = vector.load %arg2[%c0_3, %c0_4, %c0_5] : memref<1x96x32xf32, #tpu.memory_space<vmem>>, vector<1x96x32xf32>
    %6 = vector.shape_cast %5 : vector<1x96x32xf32> to vector<96x32xf32>
    %7 = arith.truncf %4 : vector<16x32xf32> to vector<16x32xbf16>
    %8 = arith.truncf %6 : vector<96x32xf32> to vector<96x32xbf16>
    %cst = arith.constant dense<0.000000e+00> : vector<16x96xf32>
    %9 = tpu.matmul %7, %8, %cst {dimension_numbers = #tpu.dot_dimension_numbers<[1], [1], [0], [0], [0, 0, 1, 0], [], []>} : vector<16x32xbf16>, vector<96x32xbf16>, vector<16x96xf32> -> vector<16x96xf32>
    %10 = vector.shape_cast %9 : vector<16x96xf32> to vector<2x8x96xf32>
    %11 = vector.extract_strided_slice %10 {offsets = [0, 0, 0], sizes = [2, 8, 32], strides = [1, 1, 1]} : vector<2x8x96xf32> to vector<2x8x32xf32>
    %cst_6 = arith.constant 0.353553385 : f32
    %12 = vector.broadcast %cst_6 : f32 to vector<2x8x32xf32>
    %13 = arith.mulf %11, %12 : vector<2x8x32xf32>
    %14 = vector.extract_strided_slice %10 {offsets = [0, 0, 32], sizes = [2, 8, 32], strides = [1, 1, 1]} : vector<2x8x96xf32> to vector<2x8x32xf32>
    %15 = vector.extract_strided_slice %10 {offsets = [0, 0, 64], sizes = [2, 8, 32], strides = [1, 1, 1]} : vector<2x8x96xf32> to vector<2x8x32xf32>
    %16 = vector.extract_strided_slice %13 {offsets = [0, 0, 0], sizes = [1, 8, 32], strides = [1, 1, 1]} : vector<2x8x32xf32> to vector<1x8x32xf32>
    %17 = vector.shape_cast %16 : vector<1x8x32xf32> to vector<8x32xf32>
    %18 = vector.shape_cast %17 : vector<8x32xf32> to vector<8x4x8xf32>
    %19 = tpu.transpose %18, [1, 0, 2] : vector<8x4x8xf32> -> vector<4x8x8xf32>
    %20 = arith.truncf %19 : vector<4x8x8xf32> to vector<4x8x8xbf16>
    %21 = vector.extract_strided_slice %14 {offsets = [0, 0, 0], sizes = [1, 8, 32], strides = [1, 1, 1]} : vector<2x8x32xf32> to vector<1x8x32xf32>
    %22 = vector.shape_cast %21 : vector<1x8x32xf32> to vector<8x32xf32>
    %23 = vector.shape_cast %22 : vector<8x32xf32> to vector<8x4x8xf32>
    %24 = tpu.transpose %23, [1, 0, 2] : vector<8x4x8xf32> -> vector<4x8x8xf32>
    %25 = arith.truncf %24 : vector<4x8x8xf32> to vector<4x8x8xbf16>
    %26 = vector.extract_strided_slice %15 {offsets = [0, 0, 0], sizes = [1, 8, 32], strides = [1, 1, 1]} : vector<2x8x32xf32> to vector<1x8x32xf32>
    %27 = vector.shape_cast %26 : vector<1x8x32xf32> to vector<8x32xf32>
    %28 = vector.shape_cast %27 : vector<8x32xf32> to vector<8x4x8xf32>
    %29 = tpu.transpose %28, [1, 0, 2] : vector<8x4x8xf32> -> vector<4x8x8xf32>
    %30 = arith.truncf %29 : vector<4x8x8xf32> to vector<4x8x8xbf16>
    "tpu.trace_start"() <{level = 10 : i32, message = "hqd,hkd->hqk"}> : () -> ()
    %cst_7 = arith.constant dense<0.000000e+00> : vector<4x8x8xf32>
    %31 = tpu.matmul %20, %25, %cst_7 {dimension_numbers = #tpu.dot_dimension_numbers<[2], [2], [1], [1], [0, 0, 0, 1, 1, 1], [0], [0]>} : vector<4x8x8xbf16>, vector<4x8x8xbf16>, vector<4x8x8xf32> -> vector<4x8x8xf32>
    "tpu.trace_stop"() : () -> ()
    %cst_8 = arith.constant dense<0xFF800000> : vector<4x8xf32>
    %32 = vector.multi_reduction <maximumf>, %31, %cst_8 [2] : vector<4x8x8xf32> to vector<4x8xf32>
    %33 = vector.shape_cast %32 : vector<4x8xf32> to vector<4x8x1xf32>
    %34 = vector.broadcast %33 : vector<4x8x1xf32> to vector<4x8x8xf32>
    %35 = arith.subf %31, %34 : vector<4x8x8xf32>
    %36 = math.exp %35 : vector<4x8x8xf32>
    %cst_9 = arith.constant dense<0.000000e+00> : vector<4x8xf32>
    %37 = vector.multi_reduction <add>, %36, %cst_9 [2] : vector<4x8x8xf32> to vector<4x8xf32>
    %38 = vector.shape_cast %37 : vector<4x8xf32> to vector<4x8x1xf32>
    %39 = tpu.reciprocal %38 {approx = true} : vector<4x8x1xf32> -> vector<4x8x1xf32>
    %40 = vector.broadcast %39 : vector<4x8x1xf32> to vector<4x8x8xf32>
    %41 = arith.mulf %36, %40 : vector<4x8x8xf32>
    %42 = arith.truncf %41 : vector<4x8x8xf32> to vector<4x8x8xbf16>
    "tpu.trace_start"() <{level = 10 : i32, message = "hqk,hkd->hqd"}> : () -> ()
    %cst_10 = arith.constant dense<0.000000e+00> : vector<4x8x8xf32>
    %43 = tpu.matmul %42, %30, %cst_10 {dimension_numbers = #tpu.dot_dimension_numbers<[2], [1], [1], [2], [0, 0, 0, 1, 1, 2], [0], [0]>} : vector<4x8x8xbf16>, vector<4x8x8xbf16>, vector<4x8x8xf32> -> vector<4x8x8xf32>
    "tpu.trace_stop"() : () -> ()
    %44 = tpu.transpose %43, [1, 0, 2] : vector<4x8x8xf32> -> vector<8x4x8xf32>
    %45 = vector.shape_cast %44 : vector<8x4x8xf32> to vector<8x32xf32>
    %46 = vector.extract_strided_slice %13 {offsets = [1, 0, 0], sizes = [1, 8, 32], strides = [1, 1, 1]} : vector<2x8x32xf32> to vector<1x8x32xf32>
    %47 = vector.shape_cast %46 : vector<1x8x32xf32> to vector<8x32xf32>
    %48 = vector.shape_cast %47 : vector<8x32xf32> to vector<8x4x8xf32>
    %49 = tpu.transpose %48, [1, 0, 2] : vector<8x4x8xf32> -> vector<4x8x8xf32>
    %50 = arith.truncf %49 : vector<4x8x8xf32> to vector<4x8x8xbf16>
    %51 = vector.extract_strided_slice %14 {offsets = [1, 0, 0], sizes = [1, 8, 32], strides = [1, 1, 1]} : vector<2x8x32xf32> to vector<1x8x32xf32>
    %52 = vector.shape_cast %51 : vector<1x8x32xf32> to vector<8x32xf32>
    %53 = vector.shape_cast %52 : vector<8x32xf32> to vector<8x4x8xf32>
    %54 = tpu.transpose %53, [1, 0, 2] : vector<8x4x8xf32> -> vector<4x8x8xf32>
    %55 = arith.truncf %54 : vector<4x8x8xf32> to vector<4x8x8xbf16>
    %56 = vector.extract_strided_slice %15 {offsets = [1, 0, 0], sizes = [1, 8, 32], strides = [1, 1, 1]} : vector<2x8x32xf32> to vector<1x8x32xf32>
    %57 = vector.shape_cast %56 : vector<1x8x32xf32> to vector<8x32xf32>
    %58 = vector.shape_cast %57 : vector<8x32xf32> to vector<8x4x8xf32>
    %59 = tpu.transpose %58, [1, 0, 2] : vector<8x4x8xf32> -> vector<4x8x8xf32>
    %60 = arith.truncf %59 : vector<4x8x8xf32> to vector<4x8x8xbf16>
    "tpu.trace_start"() <{level = 10 : i32, message = "hqd,hkd->hqk"}> : () -> ()
    %cst_11 = arith.constant dense<0.000000e+00> : vector<4x8x8xf32>
    %61 = tpu.matmul %50, %55, %cst_11 {dimension_numbers = #tpu.dot_dimension_numbers<[2], [2], [1], [1], [0, 0, 0, 1, 1, 1], [0], [0]>} : vector<4x8x8xbf16>, vector<4x8x8xbf16>, vector<4x8x8xf32> -> vector<4x8x8xf32>
    "tpu.trace_stop"() : () -> ()
    %cst_12 = arith.constant dense<0xFF800000> : vector<4x8xf32>
    %62 = vector.multi_reduction <maximumf>, %61, %cst_12 [2] : vector<4x8x8xf32> to vector<4x8xf32>
    %63 = vector.shape_cast %62 : vector<4x8xf32> to vector<4x8x1xf32>
    %64 = vector.broadcast %63 : vector<4x8x1xf32> to vector<4x8x8xf32>
    %65 = arith.subf %61, %64 : vector<4x8x8xf32>
    %66 = math.exp %65 : vector<4x8x8xf32>
    %cst_13 = arith.constant dense<0.000000e+00> : vector<4x8xf32>
    %67 = vector.multi_reduction <add>, %66, %cst_13 [2] : vector<4x8x8xf32> to vector<4x8xf32>
    %68 = vector.shape_cast %67 : vector<4x8xf32> to vector<4x8x1xf32>
    %69 = tpu.reciprocal %68 {approx = true} : vector<4x8x1xf32> -> vector<4x8x1xf32>
    %70 = vector.broadcast %69 : vector<4x8x1xf32> to vector<4x8x8xf32>
    %71 = arith.mulf %66, %70 : vector<4x8x8xf32>
    %72 = arith.truncf %71 : vector<4x8x8xf32> to vector<4x8x8xbf16>
    "tpu.trace_start"() <{level = 10 : i32, message = "hqk,hkd->hqd"}> : () -> ()
    %cst_14 = arith.constant dense<0.000000e+00> : vector<4x8x8xf32>
    %73 = tpu.matmul %72, %60, %cst_14 {dimension_numbers = #tpu.dot_dimension_numbers<[2], [1], [1], [2], [0, 0, 0, 1, 1, 2], [0], [0]>} : vector<4x8x8xbf16>, vector<4x8x8xbf16>, vector<4x8x8xf32> -> vector<4x8x8xf32>
    "tpu.trace_stop"() : () -> ()
    %74 = tpu.transpose %73, [1, 0, 2] : vector<4x8x8xf32> -> vector<8x4x8xf32>
    %75 = vector.shape_cast %74 : vector<8x4x8xf32> to vector<8x32xf32>
    %76 = vector.shape_cast %45 : vector<8x32xf32> to vector<1x8x32xf32>
    %77 = vector.shape_cast %75 : vector<8x32xf32> to vector<1x8x32xf32>
    %78 = tpu.concatenate %76, %77 in 0 : vector<1x8x32xf32>, vector<1x8x32xf32> -> vector<2x8x32xf32>
    %79 = vector.shape_cast %78 : vector<2x8x32xf32> to vector<16x32xf32>
    %c0_15 = arith.constant 0 : index
    %c0_16 = arith.constant 0 : index
    %c0_17 = arith.constant 0 : index
    %80 = vector.load %arg3[%c0_15, %c0_16, %c0_17] : memref<1x32x32xf32, #tpu.memory_space<vmem>>, vector<1x32x32xf32>
    %81 = vector.shape_cast %80 : vector<1x32x32xf32> to vector<32x32xf32>
    %82 = arith.truncf %79 : vector<16x32xf32> to vector<16x32xbf16>
    %83 = arith.truncf %81 : vector<32x32xf32> to vector<32x32xbf16>
    %cst_18 = arith.constant dense<0.000000e+00> : vector<16x32xf32>
    %84 = tpu.matmul %82, %83, %cst_18 {dimension_numbers = #tpu.dot_dimension_numbers<[1], [1], [0], [0], [0, 0, 1, 0], [], []>} : vector<16x32xbf16>, vector<32x32xbf16>, vector<16x32xf32> -> vector<16x32xf32>
    %85 = vector.shape_cast %84 : vector<16x32xf32> to vector<2x8x32xf32>
    %c0_19 = arith.constant 0 : index
    %c0_20 = arith.constant 0 : index
    %c0_21 = arith.constant 0 : index
    %86 = vector.load %arg6[%c0_19, %c0_20, %c0_21] : memref<1x8x32xf32, #tpu.memory_space<vmem>>, vector<1x8x32xf32>
    %87 = vector.shape_cast %86 : vector<1x8x32xf32> to vector<8x32xf32>
    %c0_22 = arith.constant 0 : index
    %c0_23 = arith.constant 0 : index
    %c0_24 = arith.constant 0 : index
    %88 = vector.load %arg7[%c0_22, %c0_23, %c0_24] : memref<1x8x32xf32, #tpu.memory_space<vmem>>, vector<1x8x32xf32>
    %89 = vector.shape_cast %88 : vector<1x8x32xf32> to vector<8x32xf32>
    %90 = arith.addf %3, %85 : vector<2x8x32xf32>
    %cst_25 = arith.constant dense<0.000000e+00> : vector<2x8xf32>
    %91 = vector.multi_reduction <add>, %90, %cst_25 [2] : vector<2x8x32xf32> to vector<2x8xf32>
    %92 = vector.shape_cast %91 : vector<2x8xf32> to vector<2x8x1xf32>
    %cst_26 = arith.constant dense<0.000000e+00> : vector<2x1xf32>
    %93 = vector.multi_reduction <add>, %92, %cst_26 [1] : vector<2x8x1xf32> to vector<2x1xf32>
    %94 = vector.shape_cast %93 : vector<2x1xf32> to vector<2x1x1xf32>
    %cst_27 = arith.constant 2.560000e+02 : f32
    %95 = vector.broadcast %cst_27 : f32 to vector<2x1x1xf32>
    %96 = arith.divf %94, %95 : vector<2x1x1xf32>
    %97 = vector.broadcast %96 : vector<2x1x1xf32> to vector<2x8x32xf32>
    %98 = arith.subf %90, %97 : vector<2x8x32xf32>
    %99 = arith.mulf %98, %98 : vector<2x8x32xf32>
    %cst_28 = arith.constant dense<0.000000e+00> : vector<2x8xf32>
    %100 = vector.multi_reduction <add>, %99, %cst_28 [2] : vector<2x8x32xf32> to vector<2x8xf32>
    %101 = vector.shape_cast %100 : vector<2x8xf32> to vector<2x8x1xf32>
    %cst_29 = arith.constant dense<0.000000e+00> : vector<2x1xf32>
    %102 = vector.multi_reduction <add>, %101, %cst_29 [1] : vector<2x8x1xf32> to vector<2x1xf32>
    %103 = vector.shape_cast %102 : vector<2x1xf32> to vector<2x1x1xf32>
    %cst_30 = arith.constant 2.550000e+02 : f32
    %104 = vector.broadcast %cst_30 : f32 to vector<2x1x1xf32>
    %105 = arith.divf %103, %104 : vector<2x1x1xf32>
    %cst_31 = arith.constant 9.99999974E-6 : f32
    %106 = vector.broadcast %cst_31 : f32 to vector<2x1x1xf32>
    %107 = arith.addf %105, %106 : vector<2x1x1xf32>
    %108 = math.rsqrt %107 : vector<2x1x1xf32>
    %109 = vector.broadcast %108 : vector<2x1x1xf32> to vector<2x8x32xf32>
    %110 = arith.mulf %98, %109 : vector<2x8x32xf32>
    %111 = vector.shape_cast %87 : vector<8x32xf32> to vector<1x8x32xf32>
    %112 = vector.broadcast %111 : vector<1x8x32xf32> to vector<2x8x32xf32>
    %113 = arith.mulf %110, %112 : vector<2x8x32xf32>
    %114 = vector.shape_cast %89 : vector<8x32xf32> to vector<1x8x32xf32>
    %115 = vector.broadcast %114 : vector<1x8x32xf32> to vector<2x8x32xf32>
    %116 = arith.addf %113, %115 : vector<2x8x32xf32>
    %117 = vector.shape_cast %116 : vector<2x8x32xf32> to vector<16x32xf32>
    %c0_32 = arith.constant 0 : index
    %c0_33 = arith.constant 0 : index
    %c0_34 = arith.constant 0 : index
    %118 = vector.load %arg4[%c0_32, %c0_33, %c0_34] : memref<1x128x32xf32, #tpu.memory_space<vmem>>, vector<1x128x32xf32>
    %119 = vector.shape_cast %118 : vector<1x128x32xf32> to vector<128x32xf32>
    %120 = arith.truncf %117 : vector<16x32xf32> to vector<16x32xbf16>
    %121 = arith.truncf %119 : vector<128x32xf32> to vector<128x32xbf16>
    %cst_35 = arith.constant dense<0.000000e+00> : vector<16x128xf32>
    %122 = tpu.matmul %120, %121, %cst_35 {dimension_numbers = #tpu.dot_dimension_numbers<[1], [1], [0], [0], [0, 0, 1, 0], [], []>} : vector<16x32xbf16>, vector<128x32xbf16>, vector<16x128xf32> -> vector<16x128xf32>
    %cst_36 = arith.constant 0.000000e+00 : f32
    %123 = vector.broadcast %cst_36 : f32 to vector<16x128xf32>
    %124 = arith.maximumf %122, %123 : vector<16x128xf32>
    %c0_37 = arith.constant 0 : index
    %c0_38 = arith.constant 0 : index
    %c0_39 = arith.constant 0 : index
    %125 = vector.load %arg5[%c0_37, %c0_38, %c0_39] : memref<1x32x128xf32, #tpu.memory_space<vmem>>, vector<1x32x128xf32>
    %126 = vector.shape_cast %125 : vector<1x32x128xf32> to vector<32x128xf32>
    %127 = arith.truncf %124 : vector<16x128xf32> to vector<16x128xbf16>
    %128 = arith.truncf %126 : vector<32x128xf32> to vector<32x128xbf16>
    %cst_40 = arith.constant dense<0.000000e+00> : vector<16x32xf32>
    %129 = tpu.matmul %127, %128, %cst_40 {dimension_numbers = #tpu.dot_dimension_numbers<[1], [1], [0], [0], [0, 0, 1, 0], [], []>} : vector<16x128xbf16>, vector<32x128xbf16>, vector<16x32xf32> -> vector<16x32xf32>
    %130 = vector.shape_cast %129 : vector<16x32xf32> to vector<2x8x32xf32>
    %c0_41 = arith.constant 0 : index
    %c0_42 = arith.constant 0 : index
    %c0_43 = arith.constant 0 : index
    %131 = vector.load %arg8[%c0_41, %c0_42, %c0_43] : memref<1x8x32xf32, #tpu.memory_space<vmem>>, vector<1x8x32xf32>
    %132 = vector.shape_cast %131 : vector<1x8x32xf32> to vector<8x32xf32>
    %c0_44 = arith.constant 0 : index
    %c0_45 = arith.constant 0 : index
    %c0_46 = arith.constant 0 : index
    %133 = vector.load %arg9[%c0_44, %c0_45, %c0_46] : memref<1x8x32xf32, #tpu.memory_space<vmem>>, vector<1x8x32xf32>
    %134 = vector.shape_cast %133 : vector<1x8x32xf32> to vector<8x32xf32>
    %135 = arith.addf %116, %130 : vector<2x8x32xf32>
    %cst_47 = arith.constant dense<0.000000e+00> : vector<2x8xf32>
    %136 = vector.multi_reduction <add>, %135, %cst_47 [2] : vector<2x8x32xf32> to vector<2x8xf32>
    %137 = vector.shape_cast %136 : vector<2x8xf32> to vector<2x8x1xf32>
    %cst_48 = arith.constant dense<0.000000e+00> : vector<2x1xf32>
    %138 = vector.multi_reduction <add>, %137, %cst_48 [1] : vector<2x8x1xf32> to vector<2x1xf32>
    %139 = vector.shape_cast %138 : vector<2x1xf32> to vector<2x1x1xf32>
    %cst_49 = arith.constant 2.560000e+02 : f32
    %140 = vector.broadcast %cst_49 : f32 to vector<2x1x1xf32>
    %141 = arith.divf %139, %140 : vector<2x1x1xf32>
    %142 = vector.broadcast %141 : vector<2x1x1xf32> to vector<2x8x32xf32>
    %143 = arith.subf %135, %142 : vector<2x8x32xf32>
    %144 = arith.mulf %143, %143 : vector<2x8x32xf32>
    %cst_50 = arith.constant dense<0.000000e+00> : vector<2x8xf32>
    %145 = vector.multi_reduction <add>, %144, %cst_50 [2] : vector<2x8x32xf32> to vector<2x8xf32>
    %146 = vector.shape_cast %145 : vector<2x8xf32> to vector<2x8x1xf32>
    %cst_51 = arith.constant dense<0.000000e+00> : vector<2x1xf32>
    %147 = vector.multi_reduction <add>, %146, %cst_51 [1] : vector<2x8x1xf32> to vector<2x1xf32>
    %148 = vector.shape_cast %147 : vector<2x1xf32> to vector<2x1x1xf32>
    %cst_52 = arith.constant 2.550000e+02 : f32
    %149 = vector.broadcast %cst_52 : f32 to vector<2x1x1xf32>
    %150 = arith.divf %148, %149 : vector<2x1x1xf32>
    %cst_53 = arith.constant 9.99999974E-6 : f32
    %151 = vector.broadcast %cst_53 : f32 to vector<2x1x1xf32>
    %152 = arith.addf %150, %151 : vector<2x1x1xf32>
    %153 = math.rsqrt %152 : vector<2x1x1xf32>
    %154 = vector.broadcast %153 : vector<2x1x1xf32> to vector<2x8x32xf32>
    %155 = arith.mulf %143, %154 : vector<2x8x32xf32>
    %156 = vector.shape_cast %132 : vector<8x32xf32> to vector<1x8x32xf32>
    %157 = vector.broadcast %156 : vector<1x8x32xf32> to vector<2x8x32xf32>
    %158 = arith.mulf %155, %157 : vector<2x8x32xf32>
    %159 = vector.shape_cast %134 : vector<8x32xf32> to vector<1x8x32xf32>
    %160 = vector.broadcast %159 : vector<1x8x32xf32> to vector<2x8x32xf32>
    %161 = arith.addf %158, %160 : vector<2x8x32xf32>
    %c0_54 = arith.constant 0 : index
    %c0_55 = arith.constant 0 : index
    %c0_56 = arith.constant 0 : index
    %162 = vector.load %arg11[%c0_54, %c0_55, %c0_56] : memref<2x8x32xf32, #tpu.memory_space<vmem>>, vector<2x8x32xf32>
    tpu.vector_store %arg11[%c0_54, %c0_55, %c0_56], %161 {strides = array<i32>} : memref<2x8x32xf32, #tpu.memory_space<vmem>>, vector<2x8x32xf32>,
    %c1_i32 = arith.constant 1 : i32
    %163 = arith.cmpi eq, %arg0, %c1_i32 : i32
    %164 = arith.extui %163 : i1 to i32
    %c0_i32_57 = arith.constant 0 : i32
    %165 = arith.cmpi ne, %164, %c0_i32_57 : i32
    scf.if %165 {
      %c0_58 = arith.constant 0 : index
      %c0_59 = arith.constant 0 : index
      %c0_60 = arith.constant 0 : index
      %166 = vector.load %arg10[%c0_58, %c0_59, %c0_60] : memref<2x8x32xf32, #tpu.memory_space<vmem>>, vector<2x8x32xf32>
      tpu.vector_store %arg10[%c0_58, %c0_59, %c0_60], %161 {strides = array<i32>} : memref<2x8x32xf32, #tpu.memory_space<vmem>>, vector<2x8x32xf32>,
    } else {
    }
    return
  }
  func.func @transform_0(%arg0: i32) -> (i32, i32, i32) {
    %c0_i32 = arith.constant 0 : i32
    %c0_i32_0 = arith.constant 0 : i32
    %c0_i32_1 = arith.constant 0 : i32
    %c0_i32_2 = arith.constant 0 : i32
    return %c0_i32, %c0_i32_0, %c0_i32_1 : i32, i32, i32
  }
  func.func @transform_1(%arg0: i32) -> (i32, i32, i32) {
    %c0_i32 = arith.constant 0 : i32
    %c0_i32_0 = arith.constant 0 : i32
    %c0_i32_1 = arith.constant 0 : i32
    return %arg0, %c0_i32, %c0_i32_0 : i32, i32, i32
  }
  func.func @transform_2(%arg0: i32) -> (i32, i32, i32) {
    %c0_i32 = arith.constant 0 : i32
    %c0_i32_0 = arith.constant 0 : i32
    %c0_i32_1 = arith.constant 0 : i32
    return %arg0, %c0_i32, %c0_i32_0 : i32, i32, i32
  }
  func.func @transform_3(%arg0: i32) -> (i32, i32, i32) {
    %c0_i32 = arith.constant 0 : i32
    %c0_i32_0 = arith.constant 0 : i32
    %c0_i32_1 = arith.constant 0 : i32
    return %arg0, %c0_i32, %c0_i32_0 : i32, i32, i32
  }
  func.func @transform_4(%arg0: i32) -> (i32, i32, i32) {
    %c0_i32 = arith.constant 0 : i32
    %c0_i32_0 = arith.constant 0 : i32
    %c0_i32_1 = arith.constant 0 : i32
    return %arg0, %c0_i32, %c0_i32_0 : i32, i32, i32
  }
  func.func @transform_5(%arg0: i32) -> (i32, i32, i32) {
    %c0_i32 = arith.constant 0 : i32
    %c0_i32_0 = arith.constant 0 : i32
    %c0_i32_1 = arith.constant 0 : i32
    return %arg0, %c0_i32, %c0_i32_0 : i32, i32, i32
  }
  func.func @transform_6(%arg0: i32) -> (i32, i32, i32) {
    %c0_i32 = arith.constant 0 : i32
    %c0_i32_0 = arith.constant 0 : i32
    %c0_i32_1 = arith.constant 0 : i32
    return %arg0, %c0_i32, %c0_i32_0 : i32, i32, i32
  }
  func.func @transform_7(%arg0: i32) -> (i32, i32, i32) {
    %c0_i32 = arith.constant 0 : i32
    %c0_i32_0 = arith.constant 0 : i32
    %c0_i32_1 = arith.constant 0 : i32
    return %arg0, %c0_i32, %c0_i32_0 : i32, i32, i32
  }
  func.func @transform_8(%arg0: i32) -> (i32, i32, i32) {
    %c0_i32 = arith.constant 0 : i32
    %c0_i32_0 = arith.constant 0 : i32
    %c0_i32_1 = arith.constant 0 : i32
    return %arg0, %c0_i32, %c0_i32_0 : i32, i32, i32
  }
  func.func @transform_9(%arg0: i32) -> (i32, i32, i32) {
    %c0_i32 = arith.constant 0 : i32
    %c0_i32_0 = arith.constant 0 : i32
    %c0_i32_1 = arith.constant 0 : i32
    %c0_i32_2 = arith.constant 0 : i32
    return %c0_i32, %c0_i32_0, %c0_i32_1 : i32, i32, i32
  }
}

</mosaic_0001>

<bundles_post_ra>
// kernel: tpu_custom_call.1
= control target key start
LH: loop header
LB: loop body
LE: loop exit
PB: predicated region body
PF: predicated region fallthrough
CT: control target
= control target key end

     0   :  { %14 = vsyncpa [#allocation4], 0  ;;  %s3510_s30 = smov 0   ;;  %s4093_s0 = inlined_call_operand.vmem [shape: f32[2,8,32], index: 0, kind: input, shape index: {}]   ;;  %s4094_s1 = inlined_call_operand.vmem [shape: f32[2,96,32], index: 1, kind: input, shape index: {}]   ;;  %s4095_s2 = inlined_call_operand.vmem [shape: f32[2,32,32], index: 2, kind: input, shape index: {}]   ;;  %s4096_s3 = inlined_call_operand.vmem [shape: f32[2,128,32], index: 3, kind: input, shape index: {}]   ;;  %s4097_s4 = inlined_call_operand.vmem [shape: f32[2,32,128], index: 4, kind: input, shape index: {}]   ;;  %s4098_s5 = inlined_call_operand.vmem [shape: f32[2,8,32], index: 5, kind: input, shape index: {}]   ;;  %s4099_s6 = inlined_call_operand.vmem [shape: f32[2,8,32], index: 6, kind: input, shape index: {}]   ;;  %s4100_s7 = inlined_call_operand.vmem [shape: f32[2,8,32], index: 7, kind: input, shape index: {}]   ;;  %s4101_s8 = inlined_call_operand.vmem [shape: f32[2,8,32], index: 8, kind: input, shape index: {}]   ;;  %s4102_s9 = inlined_call_operand.hbm [shape: f32[2,8,32], index: 9, kind: output, shape index: {}]  }
   0x1 LB: > { %s3516_s10 = sadd.s32 4294967295, %s3444_s30   ;;  %p3064_p0 = scmp.ge.s32.totalorder %s3444_s30, 1  ;;  %s3444_s30 = sphi %s3510_s30, %s20_s30  }
   0x2   : > { %p349_p1 = scmp.lt.s32.totalorder %s3444_s30, 3 }
   0x4   : > { %p350_p2 = pnand %p3064_p0, %p349_p1 }
   0x5   : > { %p411_p3 = scmp.lt.s32.totalorder (!%p350_p2), %s3516_s10, 1  ;;  %p3076_p4 = scmp.ne.s32.totalorder (!%p350_p2), %s3516_s10, 0 }
   0x6   : > { %353 = sbr.rel (%p350_p2) target bundleno = 3431 (0xd67), region = 56 }
   0xd   : > { %s412_s11 = scalar_select %p411_p3, %s3516_s10, 1 }
   0xe   : > { %451 = sbr.rel (%p3076_p4) target bundleno = 21 (0x15), region = 60  ;;  %v452_v0 = vld [vmem:[%s4093_s0] sm:$0xff] (!%p3076_p4)  ;;  %vm454_vm0 = vcmask (!%p3076_p4), 261120   ;;  %v453_v1 = vld [vmem:[%s4093_s0 + $0x8] sm:$0xff] (!%p3076_p4) }
   0xf   : > { %s3322_s12 = smul.u32 96, %s412_s11  ;;  %s3117_s13 = sshll.u32 %s412_s11, 5  ;;  %455 = vst.msk [vmem:[#allocation2] sm:$0xff] (!%p3076_p4), %vm454_vm0, %v452_v0  ;;  %456 = vst.msk [vmem:[#allocation2 + $0x8] sm:$0xff] (!%p3076_p4), %vm454_vm0, %v453_v1 }
  0x10   : > { %s3525_s16 = scalar_lea.vmem %s4095_s2, %s3117_s13  ;;  %s3118_s17 = sshll.u32 %s412_s11, 7 }
  0x11   : > { %s3530_s20 = scalar_lea.vmem %s4094_s1, %s3322_s12  ;;  %s3535_s23 = scalar_lea.vmem %s4096_s3, %s3118_s17 }
  0x12   : > { %s3540_s26 = scalar_lea.vmem %s4097_s4, %s3117_s13  ;;  %s3542_s27 = sshll.u32 %s412_s11, 3 }
  0x13   : > { %s434_s12 = scalar_lea.vmem %s4098_s5, %s3542_s27  ;;  %s438_s17 = scalar_lea.vmem %s4099_s6, %s3542_s27 }
  0x14   : > { %s442_s21 = scalar_lea.vmem %s4100_s7, %s3542_s27  ;;  %s446_s11 = scalar_lea.vmem %s4101_s8, %s3542_s27 }
  0x15 PF: > { %v459_v2 = vld [vmem:[%s3530_s20] sm:$0xff]  ;;  %v460_v3 = vld [vmem:[%s3530_s20 + $0x8] sm:$0xff]  ;;  %vm478_vm1 = vcmask 261120   ;;  %v3446_v4 = vmov 0.0   ;;  %vm3447_vm2 = vmmov 0   ;;  %v461_v6 = vld [vmem:[%s3530_s20 + $0x10] sm:$0xff]  ;;  %v558_v40 = vlaneseq }
  0x16   : > { %3174 = vmatprep.subr.bf16.mxu0 %v3446_v4  ;;  %v472_v5 = vpack.c.bf16 %v460_v3, %v459_v2  ;;  %3186 = vmatprep.mubr.msk.bf16.mxu0 %vm3447_vm2, %v3446_v4  ;;  %v462_v7 = vld [vmem:[%s3530_s20 + $0x18] sm:$0xff]  ;;  %v463_v11 = vld [vmem:[%s3530_s20 + $0x20] sm:$0xff]  ;;  %v464_v12 = vld [vmem:[%s3530_s20 + $0x28] sm:$0xff]  ;;  %s3449_s14 = smov 120   ;;  %s3450_s15 = smov 96   ;;  %vm1004_vm3 = vcmask 64512  }
  0x17   : > { %3202 = vmatprep.subr.bf16.mxu1 %v3446_v4  ;;  %3204 = vmatprep.mubr.msk.bf16.mxu1 %vm3447_vm2, %v3446_v4  ;;  %v473_v9 = vpack.c.bf16 %v462_v7, %v461_v6  ;;  %v474_v13 = vpack.c.bf16 %v464_v12, %v463_v11  ;;  %v465_v15 = vld [vmem:[%s3530_s20 + $0x30] sm:$0xff]  ;;  %v466_v16 = vld [vmem:[%s3530_s20 + $0x38] sm:$0xff]  ;;  %v467_v19 = vld [vmem:[%s3530_s20 + $0x40] sm:$0xff]  ;;  %s3451_s18 = smov 112   ;;  %v3452_v38 = vmov 1983009808  }
  0x18   : > { %v483_v8 = vsel %vm478_vm1, %v472_v5, 0  ;;  %v475_v17 = vpack.c.bf16 %v466_v16, %v465_v15  ;;  %v468_v20 = vld [vmem:[%s3530_s20 + $0x48] sm:$0xff]  ;;  %v469_v23 = vld [vmem:[%s3530_s20 + $0x50] sm:$0xff]  ;;  %v470_v24 = vld [vmem:[%s3530_s20 + $0x58] sm:$0xff]  ;;  %s3448_s20 = smov 104   ;;  %v556_v39 = vunpack.c.l.s4 %v3452_v38  ;;  %v559_v44 = vshrl.u32 %v558_v40, 7 }
  0x19   : > { %3175 = vmatpush3.bf16.xpose.msra.mxu0 %v483_v8  ;;  %v486_v10 = vsel %vm478_vm1, %v473_v9, 0  ;;  %v489_v14 = vsel %vm478_vm1, %v474_v13, 0  ;;  %v476_v21 = vpack.c.bf16 %v468_v20, %v467_v19  ;;  %v477_v25 = vpack.c.bf16 %v470_v24, %v469_v23  ;;  %v457_v27 = vld [vmem:[#allocation2] sm:$0xff]  ;;  %v458_v28 = vld [vmem:[#allocation2 + $0x8] sm:$0xff]  ;;  %s3454_s19 = smov 64   ;;  %s3456_s13 = smov 8  }
  0x1a   : > { %3176 = vmatprep.subr.bf16.mxu0 %v3446_v4  ;;  %v492_v18 = vsel %vm478_vm1, %v475_v17, 0  ;;  %v471_v29 = vpack.c.bf16 %v458_v28, %v457_v27  ;;  %v3453_v41 = vmov 1934713408   ;;  %v557_v43 = vunpack.c.0.s8 %v556_v39  ;;  %s3457_s22 = smov 24   ;;  %p3112_p5 = scmp.ne.s32.totalorder %s3516_s10, 1 }
  0x1b   : > { %v495_v22 = vsel %vm478_vm1, %v476_v21, 0  ;;  %v498_v26 = vsel %vm478_vm1, %v477_v25, 0  ;;  %v588_v42 = vunpack.c.l.s4 %v3453_v41  ;;  %vm1240_vm4 = vcmask 1043456  }
  0x1c   : > { %v3628_v48 = vsub.s32 %v557_v43, %v559_v44  ;;  %vm2516_vm5 = vcmask 130048   ;;  %vm2518_vm6 = vcmask 195584  }
  0x1d   : > { %v589_v47 = vunpack.c.0.s8 %v588_v42 }
  0x1f   : > { %v3630_v55 = vsub.s32 %v589_v47, %v559_v44 }
  0x21   : > { %3177 = vmatpush3.bf16.xpose.msra.mxu0 %v486_v10 }
  0x22   : > { %3178 = vmatprep.subr.bf16.mxu0 %v3446_v4 }
  0x29   : > { %3179 = vmatpush3.bf16.xpose.msra.mxu0 %v489_v14 }
  0x2a   : > { %3180 = vmatprep.subr.bf16.mxu0 %v3446_v4 }
  0x31   : > { %3181 = vmatpush3.bf16.xpose.msra.mxu0 %v492_v18 }
  0x32   : > { %3182 = vmatprep.subr.bf16.mxu0 %v3446_v4 }
  0x39   : > { %3183 = vmatpush3.bf16.xpose.msra.mxu0 %v495_v22 }
  0x3a   : > { %3184 = vmatprep.subr.bf16.mxu0 %v3446_v4 }
  0x41   : > { %3185 = vmatpush3.bf16.xpose.msra.mxu0 %v498_v26 }
  0x42   : > { %3190 = vmatprep.subr.bf16.mxu0 %v3446_v4 }
  0x48   : > { %3187 = vmatmul.mubr.msk.bf16.vlgmr.msra.gmra.mrb[0].mxu0 %vm478_vm1, %v471_v29 }
  0x49   : > { %3192 = vmatprep.mubr.msk.bf16.mxu0 %vm3447_vm2, %v3446_v4 }
 0x11b   : > { %v3600_v30 = vpop.f32.mrb[0].mxu0 }
 0x11c   : > { %698 = vrot.lane.b32.xlu1 %v3600_v30, %s3448_s20  ;;  %694 = vrot.lane.b32.xlu0 %v3600_v30, %s3449_s14  ;;  %v3188_v31 = vpop.f32.mrb[1].mxu0  ;;  %v541_v37 = vmul.f32 0.35355338, %v3600_v30 }
 0x11d   : > { %v3606_v32 = vpop.f32.mrb[2].mxu0 }
 0x11e   : > { %v3189_v33 = vpop.f32.mrb[3].mxu0 }
 0x120   : > { %700 = vrot.lane.b32.xlu1 %v3600_v30, %s3450_s15  ;;  %696 = vrot.lane.b32.xlu0 %v3600_v30, %s3451_s18 }
 0x18e   : > { %v3612_v34 = vpop.permute.xlu0 %694  ;;  %v3616_v35 = vpop.permute.xlu1 %698 }
 0x18f   : > { %702 = vrot.lane.b32.xlu0 %v3612_v34, %s3450_s15 }
 0x192   : > { %v3618_v36 = vpop.permute.xlu0 %696  ;;  %v701_v45 = vpop.permute.xlu1 %700 }
 0x193   : > { %706 = vrot.lane.b32.xlu0 %v3616_v35, %s3450_s15  ;;  %704 = vrot.lane.b32.xlu1 %v3618_v36, %s3450_s15 }
 0x197   : > { %547 = vrot.lane.b32.xlu0 %v541_v37, %s3451_s18  ;;  %544 = vrot.lane.b32.xlu1 %v541_v37, %s3449_s14 }
 0x19b   : > { %550 = vrot.lane.b32.xlu1 %v541_v37, %s3448_s20 }
 0x201   : > { %v703_v46 = vpop.permute.xlu0 %702 }
 0x205   : > { %v705_v49 = vpop.permute.xlu1 %704  ;;  %v707_v50 = vpop.permute.xlu0 %706 }
 0x206   : > { %v712_v51 = vcombine.low %v701_v45, %v705_v49  ;;  %v713_v52 = vcombine.high %v701_v45, %v705_v49  ;;  %v728_v53 = vcombine.low %v703_v46, %v707_v50  ;;  %v729_v54 = vcombine.high %v703_v46, %v707_v50 }
 0x208   : > { %v720_v56 = vrot.slane %v712_v51, %v3628_v48  ;;  %v727_v57 = vrot.slane %v713_v52, %v3628_v48  ;;  %v736_v58 = vrot.slane %v728_v53, %v3628_v48  ;;  %v743_v59 = vrot.slane %v729_v54, %v3628_v48 }
 0x209   : > { %v545_v60 = vpop.permute.xlu1 %544  ;;  %v548_v1 = vpop.permute.xlu0 %547 }
 0x20a   : > { %v744_v61 = vcombine.low %v720_v56, %v736_v58  ;;  %v745_v62 = vcombine.high %v720_v56, %v736_v58  ;;  %v760_v63 = vcombine.low %v727_v57, %v743_v59  ;;  %v761_v0 = vcombine.high %v727_v57, %v743_v59 }
 0x20b   : > { %v553_v7 = vcombine.low %v541_v37, %v548_v1  ;;  %v554_v8 = vcombine.high %v541_v37, %v548_v1 }
 0x20c   : > { %v752_v2 = vrot.slane %v744_v61, %v3630_v55  ;;  %v759_v3 = vrot.slane %v745_v62, %v3630_v55  ;;  %v768_v5 = vrot.slane %v760_v63, %v3630_v55  ;;  %v775_v6 = vrot.slane %v761_v0, %v3630_v55 }
 0x20d   : > { %v551_v9 = vpop.permute.xlu1 %550  ;;  %v561_v20 = vrot.slane %v553_v7, %v3628_v48  ;;  %v568_v21 = vrot.slane %v554_v8, %v3628_v48 }
 0x20e   : > { %v780_v10 = vcombine.low %v752_v2, %v759_v3  ;;  %v3080_v11 = vcombine.high %v752_v2, %v759_v3  ;;  %v796_v12 = vcombine.low %v768_v5, %v775_v6  ;;  %v3081_v13 = vcombine.high %v768_v5, %v775_v6 }
 0x20f   : > { %v569_v14 = vcombine.low %v545_v60, %v551_v9  ;;  %v570_v15 = vcombine.high %v545_v60, %v551_v9 }
 0x210   : > { %v787_v16 = vrot.slane %v780_v10, %v3628_v48  ;;  %v795_v17 = vrot.slane %v3080_v11, %v3628_v48  ;;  %v803_v18 = vrot.slane %v796_v12, %v3628_v48  ;;  %v811_v19 = vrot.slane %v3081_v13, %v3628_v48 }
 0x211   : > { %v577_v22 = vrot.slane %v569_v14, %v3628_v48  ;;  %v584_v23 = vrot.slane %v570_v15, %v3628_v48 }
 0x212   : > { %v812_v24 = vcombine.low %v787_v16, %v795_v17  ;;  %v828_v25 = vcombine.low %v803_v18, %v811_v19  ;;  %v813_v26 = vcombine.high %v787_v16, %v795_v17  ;;  %v829_v27 = vcombine.high %v803_v18, %v811_v19 }
 0x213   : > { %v585_v28 = vcombine.low %v561_v20, %v577_v22  ;;  %v586_v29 = vcombine.high %v561_v20, %v577_v22  ;;  %v601_v31 = vcombine.low %v568_v21, %v584_v23  ;;  %v602_v33 = vcombine.high %v568_v21, %v584_v23 }
 0x214   : > { %v820_v37 = vrot.slane %v812_v24, %v3630_v55  ;;  %v836_v38 = vrot.slane %v828_v25, %v3630_v55  ;;  %v827_v39 = vrot.slane %v813_v26, %v3630_v55  ;;  %v843_v40 = vrot.slane %v829_v27, %v3630_v55 }
 0x215   : > { %v593_v41 = vrot.slane %v585_v28, %v3630_v55  ;;  %v600_v42 = vrot.slane %v586_v29, %v3630_v55  ;;  %v609_v43 = vrot.slane %v601_v31, %v3630_v55  ;;  %v616_v44 = vrot.slane %v602_v33, %v3630_v55 }
 0x216   : > { %v844_v45 = vcombine.low %v820_v37, %v836_v38  ;;  %v846_v46 = vcombine.low %v827_v39, %v843_v40  ;;  %v845_v61 = vcombine.high %v820_v37, %v836_v38  ;;  %v847_v2 = vcombine.high %v827_v39, %v843_v40 }
 0x217   : > { %v621_v47 = vcombine.low %v593_v41, %v600_v42  ;;  %v3078_v49 = vcombine.high %v593_v41, %v600_v42  ;;  %v637_v50 = vcombine.low %v609_v43, %v616_v44  ;;  %v3079_v51 = vcombine.high %v609_v43, %v616_v44 }
 0x218   : > { %v848_v52 = vpack.c.bf16 %v844_v45, %v844_v45  ;;  %v850_v53 = vpack.c.bf16 %v846_v46, %v846_v46  ;;  %v849_v9 = vpack.c.bf16 %v845_v61, %v845_v61  ;;  %v851_v11 = vpack.c.bf16 %v847_v2, %v847_v2 }
 0x219   : > { %v628_v54 = vrot.slane %v621_v47, %v3628_v48  ;;  %v636_v56 = vrot.slane %v3078_v49, %v3628_v48  ;;  %v644_v57 = vrot.slane %v637_v50, %v3628_v48  ;;  %v652_v58 = vrot.slane %v3079_v51, %v3628_v48 }
 0x21a   : > { %v1009_v59 = vsel %vm1004_vm3, %v848_v52, 0  ;;  %v1101_v60 = vsel %vm1004_vm3, %v850_v53, 0  ;;  %v1055_v14 = vsel %vm1004_vm3, %v849_v9, 0  ;;  %v1147_v15 = vsel %vm1004_vm3, %v851_v11, 0 }
 0x21b   : > { %v653_v62 = vcombine.low %v628_v54, %v636_v56  ;;  %v669_v63 = vcombine.low %v644_v57, %v652_v58  ;;  %3191 = vmatpush3.bf16.xpose.msra.mxu0 %v1009_v59  ;;  %3203 = vmatpush3.bf16.xpose.msra.mxu1 %v1101_v60  ;;  %v654_v0 = vcombine.high %v628_v54, %v636_v56 }
 0x21c   : > { %3196 = vmatprep.subr.bf16.mxu0 %v3446_v4  ;;  %v670_v1 = vcombine.high %v644_v57, %v652_v58  ;;  %3208 = vmatprep.subr.bf16.mxu1 %v3446_v4 }
 0x21d   : > { %v661_v3 = vrot.slane %v653_v62, %v3630_v55  ;;  %v677_v5 = vrot.slane %v669_v63, %v3630_v55  ;;  %v668_v6 = vrot.slane %v654_v0, %v3630_v55 }
 0x21e   : > { %v684_v7 = vrot.slane %v670_v1, %v3630_v55 }
 0x21f   : > { %v685_v8 = vcombine.low %v661_v3, %v677_v5  ;;  %v686_v16 = vcombine.high %v661_v3, %v677_v5 }
 0x220   : > { %v687_v10 = vcombine.low %v668_v6, %v684_v7  ;;  %v688_v17 = vcombine.high %v668_v6, %v684_v7 }
 0x221   : > { %v689_v12 = vpack.c.bf16 %v685_v8, %v685_v8  ;;  %v690_v18 = vpack.c.bf16 %v686_v16, %v686_v16 }
 0x222   : > { %v691_v13 = vpack.c.bf16 %v687_v10, %v687_v10  ;;  %v692_v19 = vpack.c.bf16 %v688_v17, %v688_v17 }
 0x223   : > { %3193 = vmatmul.mubr.msk.bf16.vlgmr.msra.gmra.mrb[4].mxu0 %vm1004_vm3, %v689_v12 }
 0x224   : > { %3205 = vmatmul.mubr.msk.bf16.vlgmr.msra.gmra.mrb[0].mxu1 %vm1004_vm3, %v691_v13  ;;  %3197 = vmatpush3.bf16.xpose.msra.mxu0 %v1055_v14 }
 0x225   : > { %3209 = vmatpush3.bf16.xpose.msra.mxu1 %v1147_v15  ;;  %3198 = vmatprep.mubr.msk.bf16.mxu0 %vm3447_vm2, %v3446_v4 }
 0x226   : > { %3210 = vmatprep.mubr.msk.bf16.mxu1 %vm3447_vm2, %v3446_v4  ;;  %3214 = vmatprep.subr.bf16.mxu1 %v3446_v4 }
 0x227   : > { %3226 = vmatprep.subr.bf16.mxu0 %v3446_v4 }
 0x22b   : > { %3199 = vmatmul.mubr.msk.bf16.vlgmr.msra.gmra.mrb[8].mxu0 %vm1004_vm3, %v690_v18 }
 0x22c   : > { %3211 = vmatmul.mubr.msk.bf16.vlgmr.msra.gmra.mrb[4].mxu1 %vm1004_vm3, %v692_v19  ;;  %3228 = vmatprep.mubr.msk.bf16.mxu0 %vm3447_vm2, %v3446_v4 }
 0x22d   : > { %3216 = vmatprep.mubr.msk.bf16.mxu1 %vm3447_vm2, %v3446_v4 }
 0x2f6   : > { %v3684_v20 = vpop.f32.mrb[4].mxu0 }
 0x2f7   : > { %v3686_v21 = vpop.f32.mrb[0].mxu1  ;;  %v3194_v22 = vpop.f32.mrb[5].mxu0  ;;  %v1189_v23 = vsel %vm1004_vm3, %v3684_v20, -inf }
 0x2f8   : > { %v3206_v24 = vpop.f32.mrb[1].mxu1  ;;  %1190 = vmax.xlane.f32.xlu0 %v1189_v23  ;;  %v1048_v25 = vpop.f32.mrb[6].mxu0  ;;  %v1195_v29 = vsel %vm1004_vm3, %v3686_v21, -inf }
 0x2f9   : > { %v1140_v26 = vpop.f32.mrb[2].mxu1  ;;  %v3195_v27 = vpop.f32.mrb[7].mxu0 }
 0x2fa   : > { %v3207_v28 = vpop.f32.mrb[3].mxu1 }
 0x2fc   : > { %1196 = vmax.xlane.f32.xlu0 %v1195_v29 }
 0x2fe   : > { %v1091_v31 = vpop.f32.mrb[8].mxu0 }
 0x2ff   : > { %v3692_v33 = vpop.f32.mrb[4].mxu1  ;;  %v3200_v37 = vpop.f32.mrb[9].mxu0  ;;  %v1192_v38 = vsel %vm1004_vm3, %v1091_v31, -inf }
 0x300   : > { %v3212_v39 = vpop.f32.mrb[5].mxu1  ;;  %v1198_v40 = vsel %vm1004_vm3, %v3692_v33, -inf  ;;  %1193 = vmax.xlane.f32.xlu1 %v1192_v38  ;;  %v1094_v41 = vpop.f32.mrb[10].mxu0 }
 0x301   : > { %v1186_v42 = vpop.f32.mrb[6].mxu1  ;;  %1199 = vmax.xlane.f32.xlu0 %v1198_v40  ;;  %v3201_v43 = vpop.f32.mrb[11].mxu0 }
 0x302   : > { %v3213_v44 = vpop.f32.mrb[7].mxu1 }
 0x311   : > { %1641 = vrot.lane.b32.xlu1 %v3606_v32, %s3449_s14 }
 0x315   : > { %1645 = vrot.lane.b32.xlu1 %v3606_v32, %s3448_s20 }
 0x317   : > { %1643 = vrot.lane.b32.xlu0 %v3606_v32, %s3451_s18 }
 0x319   : > { %1647 = vrot.lane.b32.xlu1 %v3606_v32, %s3450_s15 }
 0x31b   : > { %852 = vrot.lane.b32.xlu0 %v3600_v30, %s3454_s19 }
 0x31f   : > { %854 = vrot.lane.b32.xlu0 %v3612_v34, %s3454_s19 }
 0x323   : > { %856 = vrot.lane.b32.xlu0 %v3618_v36, %s3454_s19 }
 0x327   : > { %858 = vrot.lane.b32.xlu0 %v3616_v35, %s3454_s19  ;;  %v3728_v35 = vmul.f32 0.35355338, %v3606_v32 }
 0x385   : > { %v1191_v45 = vpop.xlane.xlu0 %1190 }
 0x386   : > { %v1201_v6 = vsub.f32 %v3684_v20, %v1191_v45 }
 0x388   : > { %v1205_v15 = vmul.f32 1.442695, %v1201_v6 }
 0x389   : > { %v1197_v46 = vpop.xlane.xlu0 %1196 }
 0x38a   : > { %v1203_v16 = vsub.f32 %v3686_v21, %v1197_v46 }
 0x38c   : > { %v1209_v27 = vmul.f32 1.442695, %v1203_v16 }
 0x38d   : > { %v1194_v47 = vpop.xlane.xlu1 %1193 }
 0x38e   : > { %v3713_v49 = vpop.xlane.xlu0 %1199  ;;  %v1202_v52 = vsub.f32 %v1091_v31, %v1194_v47 }
 0x38f   : > { %v1204_v28 = vsub.f32 %v3692_v33, %v3713_v49 }
 0x390   : > { %v1207_v54 = vmul.f32 1.442695, %v1202_v52 }
 0x391   : > { %v3715_v50 = vpop.permute.xlu1 %1641  ;;  %v1211_v33 = vmul.f32 1.442695, %v1204_v28 }
 0x392   : > { %v3717_v51 = vpop.permute.xlu0 %1643  ;;  %1649 = vrot.lane.b32.xlu0 %v3715_v50, %s3450_s15  ;;  %3366 = vpow2.f32 %v1207_v54 }
 0x393   : > { %1651 = vrot.lane.b32.xlu1 %v3717_v51, %s3450_s15  ;;  %3368 = vpow2.f32 %v1205_v15 }
 0x394   : > { %3370 = vpow2.f32 %v1209_v27 }
 0x395   : > { %v3723_v30 = vpop.permute.xlu1 %1645  ;;  %3372 = vpow2.f32 %v1211_v33 }
 0x396   : > { %v853_v34 = vpop.permute.xlu0 %852 }
 0x397   : > { %1653 = vrot.lane.b32.xlu1 %v3723_v30, %s3450_s15 }
 0x399   : > { %v1648_v54 = vpop.permute.xlu1 %1647 }
 0x39a   : > { %v855_v36 = vpop.permute.xlu0 %854 }
 0x39b   : > { %1491 = vrot.lane.b32.xlu1 %v3728_v35, %s3449_s14 }
 0x39c   : > { %v3742_v17 = vpop.eup %3366 }
 0x39d   : > { %v1216_v21 = vsel %vm1004_vm3, %v3742_v17, 0.0  ;;  %v3369_v47 = vpop.eup %3368 }
 0x39e   : > { %v857_v53 = vpop.permute.xlu0 %856  ;;  %v1213_v49 = vsel %vm1004_vm3, %v3369_v47, 0.0 }
 0x39f   : > { %v864_v56 = vcombine.low %v853_v34, %v857_v53  ;;  %v865_v57 = vcombine.high %v853_v34, %v857_v53  ;;  %v3765_v34 = vpop.eup %3370 }
 0x3a0   : > { %v3769_v52 = vpop.eup %3372 }
 0x3a1   : > { %v872_v61 = vrot.slane %v864_v56, %v3628_v48  ;;  %v879_v62 = vrot.slane %v865_v57, %v3628_v48  ;;  %v1222_v53 = vsel %vm1004_vm3, %v3769_v52, 0.0 }
 0x3a2   : > { %v859_v58 = vpop.permute.xlu0 %858 }
 0x3a3   : > { %v880_v59 = vcombine.low %v855_v36, %v859_v58  ;;  %v881_v60 = vcombine.high %v855_v36, %v859_v58  ;;  %v1219_v36 = vsel %vm1004_vm3, %v3765_v34, 0.0 }
 0x3a5   : > { %v888_v63 = vrot.slane %v880_v59, %v3628_v48  ;;  %v895_v0 = vrot.slane %v881_v60, %v3628_v48 }
 0x3a7   : > { %v896_v1 = vcombine.low %v872_v61, %v888_v63  ;;  %v897_v2 = vcombine.high %v872_v61, %v888_v63  ;;  %v912_v3 = vcombine.low %v879_v62, %v895_v0  ;;  %v913_v5 = vcombine.high %v879_v62, %v895_v0 }
 0x3a9   : > { %v904_v7 = vrot.slane %v896_v1, %v3630_v55  ;;  %v911_v8 = vrot.slane %v897_v2, %v3630_v55  ;;  %v920_v9 = vrot.slane %v912_v3, %v3630_v55  ;;  %v927_v10 = vrot.slane %v913_v5, %v3630_v55 }
 0x3ab   : > { %v932_v11 = vcombine.low %v904_v7, %v911_v8  ;;  %v3082_v12 = vcombine.high %v904_v7, %v911_v8  ;;  %v948_v13 = vcombine.low %v920_v9, %v927_v10  ;;  %v3083_v14 = vcombine.high %v920_v9, %v927_v10 }
 0x3ad   : > { %v939_v18 = vrot.slane %v932_v11, %v3628_v48  ;;  %v947_v19 = vrot.slane %v3082_v12, %v3628_v48  ;;  %v955_v20 = vrot.slane %v948_v13, %v3628_v48  ;;  %v963_v22 = vrot.slane %v3083_v14, %v3628_v48 }
 0x3af   : > { %v964_v23 = vcombine.low %v939_v18, %v947_v19  ;;  %v980_v24 = vcombine.low %v955_v20, %v963_v22  ;;  %v965_v25 = vcombine.high %v939_v18, %v947_v19  ;;  %v981_v26 = vcombine.high %v955_v20, %v963_v22 }
 0x3b1   : > { %1217 = vadd.xlane.f32.xlu0 %v1216_v21  ;;  %v972_v29 = vrot.slane %v964_v23, %v3630_v55  ;;  %v988_v31 = vrot.slane %v980_v24, %v3630_v55  ;;  %v979_v37 = vrot.slane %v965_v25, %v3630_v55  ;;  %v995_v38 = vrot.slane %v981_v26, %v3630_v55 }
 0x3b3   : > { %v996_v39 = vcombine.low %v972_v29, %v988_v31  ;;  %v998_v40 = vcombine.low %v979_v37, %v995_v38  ;;  %v3756_v41 = vcombine.high %v972_v29, %v988_v31  ;;  %v3758_v42 = vcombine.high %v979_v37, %v995_v38 }
 0x3b5   : > { %v1000_v43 = vpack.c.bf16 %v996_v39, %v996_v39  ;;  %v1002_v44 = vpack.c.bf16 %v998_v40, %v998_v40  ;;  %v1001_v37 = vpack.c.bf16 %v3756_v41, %v3756_v41 }
 0x3b7   : > { %v1242_v45 = vsel %vm1240_vm4, %v1000_v43, 0  ;;  %v1334_v46 = vsel %vm1240_vm4, %v1002_v44, 0 }
 0x3b8   : > { %3215 = vmatpush3.bf16.msra.mxu1 %v1242_v45  ;;  %3227 = vmatpush3.bf16.msra.mxu0 %v1334_v46 }
 0x3b9   : > { %3220 = vmatprep.subr.bf16.mxu1 %v3446_v4  ;;  %3238 = vmatprep.subr.bf16.mxu0 %v3446_v4 }
 0x3bf   : > { %1214 = vadd.xlane.f32.xlu1 %v1213_v49 }
 0x3c3   : > { %1220 = vadd.xlane.f32.xlu1 %v1219_v36 }
 0x3c7   : > { %1223 = vadd.xlane.f32.xlu1 %v1222_v53  ;;  %1494 = vrot.lane.b32.xlu0 %v3728_v35, %s3451_s18  ;;  %v1288_v53 = vsel %vm1240_vm4, %v1001_v37, 0 }
 0x3d8   : > { %1497 = vrot.lane.b32.xlu1 %v3728_v35, %s3448_s20 }
 0x404   : > { %v1650_v58 = vpop.permute.xlu0 %1649 }
 0x405   : > { %v1652_v56 = vpop.permute.xlu1 %1651 }
 0x406   : > { %v1659_v61 = vcombine.low %v1648_v54, %v1652_v56  ;;  %v1660_v62 = vcombine.high %v1648_v54, %v1652_v56 }
 0x408   : > { %v1667_v1 = vrot.slane %v1659_v61, %v3628_v48  ;;  %v1674_v2 = vrot.slane %v1660_v62, %v3628_v48 }
 0x409   : > { %v1654_v57 = vpop.permute.xlu1 %1653 }
 0x40a   : > { %v1675_v59 = vcombine.low %v1650_v58, %v1654_v57  ;;  %v1676_v60 = vcombine.high %v1650_v58, %v1654_v57 }
 0x40c   : > { %v1683_v63 = vrot.slane %v1675_v59, %v3628_v48  ;;  %v1690_v0 = vrot.slane %v1676_v60, %v3628_v48 }
 0x40d   : > { %v1492_v16 = vpop.permute.xlu1 %1491 }
 0x40e   : > { %v1691_v3 = vcombine.low %v1667_v1, %v1683_v63  ;;  %v1692_v5 = vcombine.high %v1667_v1, %v1683_v63  ;;  %v1707_v6 = vcombine.low %v1674_v2, %v1690_v0  ;;  %v1708_v7 = vcombine.high %v1674_v2, %v1690_v0 }
 0x410   : > { %v1699_v8 = vrot.slane %v1691_v3, %v3630_v55  ;;  %v1706_v9 = vrot.slane %v1692_v5, %v3630_v55  ;;  %v1715_v10 = vrot.slane %v1707_v6, %v3630_v55  ;;  %v1722_v11 = vrot.slane %v1708_v7, %v3630_v55 }
 0x412   : > { %v1727_v12 = vcombine.low %v1699_v8, %v1706_v9  ;;  %v3094_v13 = vcombine.high %v1699_v8, %v1706_v9  ;;  %v1743_v14 = vcombine.low %v1715_v10, %v1722_v11  ;;  %v3095_v15 = vcombine.high %v1715_v10, %v1722_v11 }
 0x414   : > { %v1734_v18 = vrot.slane %v1727_v12, %v3628_v48  ;;  %v1742_v19 = vrot.slane %v3094_v13, %v3628_v48  ;;  %v1750_v20 = vrot.slane %v1743_v14, %v3628_v48  ;;  %v1758_v22 = vrot.slane %v3095_v15, %v3628_v48 }
 0x416   : > { %v1759_v26 = vcombine.low %v1734_v18, %v1742_v19  ;;  %v1775_v27 = vcombine.low %v1750_v20, %v1758_v22  ;;  %v1760_v59 = vcombine.high %v1734_v18, %v1742_v19  ;;  %v1776_v60 = vcombine.high %v1750_v20, %v1758_v22 }
 0x418   : > { %v1767_v29 = vrot.slane %v1759_v26, %v3630_v55  ;;  %v1783_v31 = vrot.slane %v1775_v27, %v3630_v55  ;;  %v1774_v8 = vrot.slane %v1760_v59, %v3630_v55  ;;  %v1790_v9 = vrot.slane %v1776_v60, %v3630_v55 }
 0x41a   : > { %v1791_v44 = vcombine.low %v1767_v29, %v1783_v31 }
 0x43e   : > { %v1218_v24 = vpop.xlane.xlu0 %1217 }
 0x442   : > { %v1495_v28 = vpop.permute.xlu0 %1494 }
 0x443   : > { %v1500_v39 = vcombine.low %v3728_v35, %v1495_v28  ;;  %v1501_v40 = vcombine.high %v3728_v35, %v1495_v28 }
 0x445   : > { %v1508_v56 = vrot.slane %v1500_v39, %v3628_v48  ;;  %v1515_v41 = vrot.slane %v1501_v40, %v3628_v48 }
 0x44c   : > { %v1215_v23 = vpop.xlane.xlu1 %1214 }
 0x44d   : > { %3374 = vrcp.f32 %v1215_v23 }
 0x44e   : > { %3376 = vrcp.f32 %v1218_v24  ;;  %v1792_v24 = vcombine.high %v1767_v29, %v1783_v31 }
 0x450   : > { %v1221_v25 = vpop.xlane.xlu1 %1220  ;;  %v1796_v39 = vpack.c.bf16 %v1792_v24, %v1792_v24 }
 0x451   : > { %3378 = vrcp.f32 %v1221_v25  ;;  %v1793_v25 = vcombine.low %v1774_v8, %v1790_v9 }
 0x452   : > { %v2001_v31 = vsel %vm1004_vm3, %v1796_v39, 0 }
 0x453   : > { %v1797_v40 = vpack.c.bf16 %v1793_v25, %v1793_v25 }
 0x454   : > { %v1224_v21 = vpop.xlane.xlu1 %1223 }
 0x455   : > { %3380 = vrcp.f32 %v1224_v21 }
 0x457   : > { %v3375_v38 = vpop.eup %3374 }
 0x458   : > { %v1229_v33 = vmul.f32 %v3375_v38, %v3369_v47  ;;  %v1498_v43 = vpop.permute.xlu1 %1497  ;;  %v3377_v49 = vpop.eup %3376  ;;  %v1795_v47 = vpack.c.bf16 %v1791_v44, %v1791_v44  ;;  %v2047_v44 = vsel %vm1004_vm3, %v1797_v40, 0 }
 0x459   : > { %v1516_v45 = vcombine.low %v1492_v16, %v1498_v43  ;;  %v1517_v46 = vcombine.high %v1492_v16, %v1498_v43  ;;  %v1230_v1 = vmul.f32 %v3377_v49, %v3742_v17  ;;  %v1003_v17 = vpack.c.bf16 %v3758_v42, %v3758_v42 }
 0x45a   : > { %v1233_v36 = vpack.c.bf16 %v1229_v33, %v1229_v33  ;;  %v1955_v7 = vsel %vm1004_vm3, %v1795_v47, 0 }
 0x45b   : > { %v3379_v54 = vpop.eup %3378  ;;  %v1524_v57 = vrot.slane %v1516_v45, %v3628_v48  ;;  %v1531_v58 = vrot.slane %v1517_v46, %v3628_v48  ;;  %v1234_v14 = vpack.c.bf16 %v1230_v1, %v1230_v1  ;;  %v1380_v20 = vsel %vm1240_vm4, %v1003_v17, 0 }
 0x45c   : > { %v1231_v35 = vmul.f32 %v3379_v54, %v3765_v34  ;;  %3217 = vmatmul.mubr.msk.bf16.vlgmr.msra.gmra.mrb[8].mxu1 %vm1004_vm3, %v1233_v36  ;;  %v1794_v45 = vcombine.high %v1774_v8, %v1790_v9 }
 0x45d   : > { %v1532_v61 = vcombine.low %v1508_v56, %v1524_v57  ;;  %v1533_v62 = vcombine.high %v1508_v56, %v1524_v57  ;;  %v1548_v63 = vcombine.low %v1515_v41, %v1531_v58  ;;  %v1549_v0 = vcombine.high %v1515_v41, %v1531_v58  ;;  %3221 = vmatpush3.bf16.msra.mxu1 %v1288_v53 }
 0x45e   : > { %v1235_v2 = vpack.c.bf16 %v1231_v35, %v1231_v35  ;;  %3222 = vmatprep.mubr.msk.bf16.mxu1 %vm3447_vm2, %v3446_v4  ;;  %3232 = vmatprep.subr.bf16.mxu1 %v3446_v4  ;;  %v1798_v36 = vpack.c.bf16 %v1794_v45, %v1794_v45 }
 0x45f   : > { %v1540_v34 = vrot.slane %v1532_v61, %v3630_v55  ;;  %v1547_v3 = vrot.slane %v1533_v62, %v3630_v55  ;;  %v1556_v5 = vrot.slane %v1548_v63, %v3630_v55  ;;  %v1563_v6 = vrot.slane %v1549_v0, %v3630_v55  ;;  %v3381_v15 = vpop.eup %3380 }
 0x460   : > { %3229 = vmatmul.mubr.msk.bf16.vlgmr.msra.gmra.mrb[12].mxu0 %vm1004_vm3, %v1235_v2  ;;  %v1232_v26 = vmul.f32 %v3381_v15, %v3769_v52  ;;  %v2093_v56 = vsel %vm1004_vm3, %v1798_v36, 0 }
 0x461   : > { %v1568_v10 = vcombine.low %v1540_v34, %v1547_v3  ;;  %v3092_v11 = vcombine.high %v1540_v34, %v1547_v3  ;;  %v1584_v12 = vcombine.low %v1556_v5, %v1563_v6  ;;  %v3093_v13 = vcombine.high %v1556_v5, %v1563_v6  ;;  %3239 = vmatpush3.bf16.xpose.msra.mxu0 %v1955_v7 }
 0x462   : > { %3240 = vmatprep.mubr.msk.bf16.mxu0 %vm3447_vm2, %v3446_v4  ;;  %3250 = vmatprep.subr.bf16.mxu0 %v3446_v4  ;;  %v1236_v33 = vpack.c.bf16 %v1232_v26, %v1232_v26 }
 0x463   : > { %v1575_v16 = vrot.slane %v1568_v10, %v3628_v48  ;;  %v1583_v42 = vrot.slane %v3092_v11, %v3628_v48  ;;  %v1591_v18 = vrot.slane %v1584_v12, %v3628_v48  ;;  %v1599_v19 = vrot.slane %v3093_v13, %v3628_v48 }
 0x464   : > { %3223 = vmatmul.mubr.msk.bf16.vlgmr.msra.gmra.mrb[12].mxu1 %vm1004_vm3, %v1234_v14 }
 0x465   : > { %v1600_v22 = vcombine.low %v1575_v16, %v1583_v42  ;;  %v1616_v23 = vcombine.low %v1591_v18, %v1599_v19  ;;  %3233 = vmatpush3.bf16.msra.mxu1 %v1380_v20  ;;  %3234 = vmatprep.mubr.msk.bf16.mxu1 %vm3447_vm2, %v3446_v4  ;;  %v1601_v27 = vcombine.high %v1575_v16, %v1583_v42 }
 0x466   : > { %3244 = vmatprep.subr.bf16.mxu1 %v3446_v4  ;;  %v1617_v28 = vcombine.high %v1591_v18, %v1599_v19 }
 0x467   : > { %v1608_v21 = vrot.slane %v1600_v22, %v3630_v55  ;;  %v1624_v37 = vrot.slane %v1616_v23, %v3630_v55  ;;  %v1615_v29 = vrot.slane %v1601_v27, %v3630_v55 }
 0x468   : > { %v1631_v52 = vrot.slane %v1617_v28, %v3630_v55 }
 0x469   : > { %v1632_v38 = vcombine.low %v1608_v21, %v1624_v37  ;;  %v1633_v46 = vcombine.high %v1608_v21, %v1624_v37 }
 0x46a   : > { %v1634_v49 = vcombine.low %v1615_v29, %v1631_v52  ;;  %v1635_v41 = vcombine.high %v1615_v29, %v1631_v52 }
 0x46b   : > { %v1636_v43 = vpack.c.bf16 %v1632_v38, %v1632_v38  ;;  %v1637_v53 = vpack.c.bf16 %v1633_v46, %v1633_v46 }
 0x46c   : > { %3235 = vmatmul.mubr.msk.bf16.vlgmr.msra.gmra.mrb[16].mxu1 %vm1004_vm3, %v1236_v33  ;;  %v1638_v54 = vpack.c.bf16 %v1634_v49, %v1634_v49  ;;  %v1639_v57 = vpack.c.bf16 %v1635_v41, %v1635_v41 }
 0x46d   : > { %3241 = vmatmul.mubr.msk.bf16.vlgmr.msra.gmra.mrb[16].mxu0 %vm1004_vm3, %v1636_v43  ;;  %3246 = vmatprep.mubr.msk.bf16.mxu1 %vm3447_vm2, %v3446_v4 }
 0x46e   : > { %3245 = vmatpush3.bf16.xpose.msra.mxu1 %v2001_v31  ;;  %3251 = vmatpush3.bf16.xpose.msra.mxu0 %v2047_v44 }
 0x46f   : > { %3252 = vmatprep.mubr.msk.bf16.mxu0 %vm3447_vm2, %v3446_v4  ;;  %3256 = vmatprep.subr.bf16.mxu1 %v3446_v4 }
 0x470   : > { %3262 = vmatprep.subr.bf16.mxu0 %v3446_v4 }
 0x475   : > { %3247 = vmatmul.mubr.msk.bf16.vlgmr.msra.gmra.mrb[20].mxu1 %vm1004_vm3, %v1637_v53  ;;  %3253 = vmatmul.mubr.msk.bf16.vlgmr.msra.gmra.mrb[20].mxu0 %vm1004_vm3, %v1638_v54 }
 0x476   : > { %3257 = vmatpush3.bf16.xpose.msra.mxu1 %v2093_v56  ;;  %3258 = vmatprep.mubr.msk.bf16.mxu1 %vm3447_vm2, %v3446_v4 }
 0x477   : > { %3268 = vmatprep.subr.bf16.mxu1 %v3446_v4  ;;  %3264 = vmatprep.mubr.msk.bf16.mxu0 %vm3447_vm2, %v3446_v4 }
 0x47d   : > { %3259 = vmatmul.mubr.msk.bf16.vlgmr.msra.gmra.mrb[24].mxu1 %vm1004_vm3, %v1639_v57 }
 0x47e   : > { %3270 = vmatprep.mubr.msk.bf16.mxu1 %vm3447_vm2, %v3446_v4 }
 0x52f   : > { %v1278_v58 = vpop.f32.mrb[8].mxu1 }
 0x530   : > { %v3218_v35 = vpop.f32.mrb[9].mxu1 }
 0x531   : > { %v1281_v47 = vpop.f32.mrb[10].mxu1 }
 0x532   : > { %v3219_v59 = vpop.f32.mrb[11].mxu1 }
 0x533   : > { %v1370_v60 = vpop.f32.mrb[12].mxu0 }
 0x534   : > { %v1422_v61 = vcombine.low %v1278_v58, %v1370_v60  ;;  %v1423_v62 = vcombine.high %v1278_v58, %v1370_v60  ;;  %v3230_v63 = vpop.f32.mrb[13].mxu0 }
 0x535   : > { %v1373_v0 = vpop.f32.mrb[14].mxu0 }
 0x536   : > { %v3231_v1 = vpop.f32.mrb[15].mxu0  ;;  %v1430_v13 = vrot.slane %v1422_v61, %v3628_v48  ;;  %v1437_v14 = vrot.slane %v1423_v62, %v3628_v48 }
 0x537   : > { %v1324_v2 = vpop.f32.mrb[12].mxu1 }
 0x538   : > { %v3224_v34 = vpop.f32.mrb[13].mxu1 }
 0x539   : > { %v1327_v3 = vpop.f32.mrb[14].mxu1 }
 0x53a   : > { %v3225_v5 = vpop.f32.mrb[15].mxu1 }
 0x53f   : > { %v1416_v6 = vpop.f32.mrb[16].mxu1 }
 0x540   : > { %v1438_v7 = vcombine.low %v1324_v2, %v1416_v6  ;;  %v1439_v17 = vcombine.high %v1324_v2, %v1416_v6  ;;  %v3236_v8 = vpop.f32.mrb[17].mxu1  ;;  %v1991_v9 = vpop.f32.mrb[16].mxu0 }
 0x541   : > { %v1419_v10 = vpop.f32.mrb[18].mxu1  ;;  %v3242_v11 = vpop.f32.mrb[17].mxu0  ;;  %v2135_v12 = vsel %vm1004_vm3, %v1991_v9, -inf }
 0x542   : > { %v1446_v15 = vrot.slane %v1438_v7, %v3628_v48  ;;  %v1453_v16 = vrot.slane %v1439_v17, %v3628_v48  ;;  %v3237_v42 = vpop.f32.mrb[19].mxu1  ;;  %2136 = vmax.xlane.f32.xlu0 %v2135_v12  ;;  %v1994_v18 = vpop.f32.mrb[18].mxu0 }
 0x543   : > { %v3243_v19 = vpop.f32.mrb[19].mxu0 }
 0x544   : > { %v1454_v20 = vcombine.low %v1430_v13, %v1446_v15  ;;  %v1455_v22 = vcombine.high %v1430_v13, %v1446_v15  ;;  %v1470_v23 = vcombine.low %v1437_v14, %v1453_v16  ;;  %v1471_v24 = vcombine.high %v1437_v14, %v1453_v16 }
 0x546   : > { %v1462_v25 = vrot.slane %v1454_v20, %v3630_v55  ;;  %v1469_v26 = vrot.slane %v1455_v22, %v3630_v55  ;;  %v1478_v27 = vrot.slane %v1470_v23, %v3630_v55  ;;  %v1485_v28 = vrot.slane %v1471_v24, %v3630_v55 }
 0x548   : > { %v2435_v21 = vcombine.low %v1462_v25, %v1469_v26  ;;  %v3106_v37 = vcombine.high %v1462_v25, %v1469_v26  ;;  %v2451_v38 = vcombine.low %v1478_v27, %v1485_v28  ;;  %v3107_v39 = vcombine.high %v1478_v27, %v1485_v28  ;;  %v2037_v40 = vpop.f32.mrb[20].mxu1  ;;  %v2083_v33 = vpop.f32.mrb[20].mxu0 }
 0x549   : > { %v3248_v43 = vpop.f32.mrb[21].mxu1  ;;  %v2138_v29 = vsel %vm1004_vm3, %v2037_v40, -inf  ;;  %v3254_v52 = vpop.f32.mrb[21].mxu0  ;;  %v2141_v31 = vsel %vm1004_vm3, %v2083_v33, -inf }
 0x54a   : > { %v2442_v44 = vrot.slane %v2435_v21, %v3628_v48  ;;  %v2450_v45 = vrot.slane %v3106_v37, %v3628_v48  ;;  %v2458_v46 = vrot.slane %v2451_v38, %v3628_v48  ;;  %v2466_v49 = vrot.slane %v3107_v39, %v3628_v48  ;;  %2139 = vmax.xlane.f32.xlu1 %v2138_v29  ;;  %v2040_v36 = vpop.f32.mrb[22].mxu1  ;;  %v2086_v53 = vpop.f32.mrb[22].mxu0 }
 0x54b   : > { %v3249_v54 = vpop.f32.mrb[23].mxu1  ;;  %2142 = vmax.xlane.f32.xlu0 %v2141_v31  ;;  %v3255_v56 = vpop.f32.mrb[23].mxu0 }
 0x54c   : > { %v2468_v41 = vcombine.high %v2442_v44, %v2450_v45  ;;  %v2484_v57 = vcombine.high %v2458_v46, %v2466_v49  ;;  %v2467_v58 = vcombine.low %v2442_v44, %v2450_v45  ;;  %v2483_v35 = vcombine.low %v2458_v46, %v2466_v49 }
 0x54e   : > { %v3870_v47 = vrot.slane %v2468_v41, %v3630_v55  ;;  %v3873_v59 = vrot.slane %v2484_v57, %v3630_v55  ;;  %v3876_v60 = vrot.slane %v2467_v58, %v3630_v55  ;;  %v3879_v61 = vrot.slane %v2483_v35, %v3630_v55 }
 0x550   : > { %v2129_v62 = vpop.f32.mrb[24].mxu1  ;;  %v2501_v63 = vcombine.low %v3870_v47, %v3873_v59  ;;  %v2499_v0 = vcombine.low %v3876_v60, %v3879_v61  ;;  %v2500_v1 = vcombine.high %v3876_v60, %v3879_v61  ;;  %v2502_v2 = vcombine.high %v3870_v47, %v3873_v59  ;;  %v3406_v61 = vld [vmem:[#allocation2] sm:$0xff] }
 0x551   : > { %v3260_v34 = vpop.f32.mrb[25].mxu1  ;;  %v2144_v3 = vsel %vm1004_vm3, %v2129_v62, -inf }
 0x552   : > { %v2132_v5 = vpop.f32.mrb[26].mxu1  ;;  %2145 = vmax.xlane.f32.xlu0 %v2144_v3 }
 0x553   : > { %v3261_v6 = vpop.f32.mrb[27].mxu1 }
 0x55b   : > { %1799 = vrot.lane.b32.xlu1 %v3606_v32, %s3454_s19 }
 0x5cf   : > { %v2137_v7 = vpop.xlane.xlu0 %2136 }
 0x5d0   : > { %v2147_v17 = vsub.f32 %v1991_v9, %v2137_v7 }
 0x5d2   : > { %v2151_v8 = vmul.f32 1.442695, %v2147_v17 }
 0x5d4   : > { %3382 = vpow2.f32 %v2151_v8 }
 0x5d7   : > { %v2140_v10 = vpop.xlane.xlu1 %2139 }
 0x5d8   : > { %v2148_v11 = vsub.f32 %v2037_v40, %v2140_v10  ;;  %v2143_v32 = vpop.xlane.xlu0 %2142 }
 0x5d9   : > { %v2149_v18 = vsub.f32 %v2083_v33, %v2143_v32 }
 0x5da   : > { %v2153_v12 = vmul.f32 1.442695, %v2148_v11 }
 0x5db   : > { %v2155_v20 = vmul.f32 1.442695, %v2149_v18 }
 0x5dc   : > { %3384 = vpow2.f32 %v2153_v12 }
 0x5de   : > { %v3892_v13 = vpop.eup %3382 }
 0x5df   : > { %v2159_v14 = vsel %vm1004_vm3, %v3892_v13, 0.0  ;;  %v2146_v9 = vpop.xlane.xlu0 %2145 }
 0x5e0   : > { %2160 = vadd.xlane.f32.xlu1 %v2159_v14  ;;  %v2150_v42 = vsub.f32 %v2129_v62, %v2146_v9 }
 0x5e2   : > { %v2157_v19 = vmul.f32 1.442695, %v2150_v42 }
 0x5e4   : > { %3386 = vpow2.f32 %v2157_v19 }
 0x5e5   : > { %3388 = vpow2.f32 %v2155_v20 }
 0x5e6   : > { %v3896_v15 = vpop.eup %3384 }
 0x5e7   : > { %v2162_v16 = vsel %vm1004_vm3, %v3896_v15, 0.0 }
 0x5e8   : > { %2163 = vadd.xlane.f32.xlu0 %v2162_v16 }
 0x5ee   : > { %v3906_v22 = vpop.eup %3386 }
 0x5ef   : > { %v2168_v23 = vsel %vm1004_vm3, %v3906_v22, 0.0 }
 0x5f1   : > { %1803 = vrot.lane.b32.xlu1 %v3717_v51, %s3454_s19  ;;  %v3910_v51 = vpop.eup %3388 }
 0x5f5   : > { %1805 = vrot.lane.b32.xlu1 %v3723_v30, %s3454_s19  ;;  %v2165_v30 = vsel %vm1004_vm3, %v3910_v51, 0.0 }
 0x5fe   : > { %1801 = vrot.lane.b32.xlu0 %v3715_v50, %s3454_s19  ;;  %v1800_v50 = vpop.permute.xlu1 %1799 }
 0x619   : > { %2169 = vadd.xlane.f32.xlu1 %v2168_v23 }
 0x61d   : > { %2166 = vadd.xlane.f32.xlu0 %v2165_v30 }
 0x66d   : > { %v2161_v24 = vpop.xlane.xlu1 %2160 }
 0x66e   : > { %3390 = vrcp.f32 %v2161_v24 }
 0x671   : > { %v1804_v25 = vpop.permute.xlu1 %1803 }
 0x672   : > { %v1811_v27 = vcombine.low %v1800_v50, %v1804_v25  ;;  %v1812_v28 = vcombine.high %v1800_v50, %v1804_v25 }
 0x674   : > { %v1819_v40 = vrot.slane %v1811_v27, %v3628_v48  ;;  %v1826_v33 = vrot.slane %v1812_v28, %v3628_v48 }
 0x675   : > { %v2164_v26 = vpop.xlane.xlu0 %2163  ;;  %v1806_v21 = vpop.permute.xlu1 %1805 }
 0x676   : > { %3392 = vrcp.f32 %v2164_v26 }
 0x678   : > { %v3391_v17 = vpop.eup %3390 }
 0x679   : > { %v1802_v37 = vpop.permute.xlu0 %1801  ;;  %v2175_v18 = vmul.f32 %v3391_v17, %v3892_v13 }
 0x67a   : > { %v1827_v38 = vcombine.low %v1802_v37, %v1806_v21  ;;  %v1828_v39 = vcombine.high %v1802_v37, %v1806_v21 }
 0x67b   : > { %v2179_v26 = vpack.c.bf16 %v2175_v18, %v2175_v18  ;;  %v2606_v18 = vld [vmem:[%s3525_s16 + $0x18] sm:$0xff] }
 0x67c   : > { %v1835_v43 = vrot.slane %v1827_v38, %v3628_v48  ;;  %v1842_v29 = vrot.slane %v1828_v39, %v3628_v48 }
 0x67e   : > { %v1843_v52 = vcombine.low %v1819_v40, %v1835_v43  ;;  %v1844_v31 = vcombine.high %v1819_v40, %v1835_v43  ;;  %v1859_v44 = vcombine.low %v1826_v33, %v1842_v29  ;;  %v1860_v45 = vcombine.high %v1826_v33, %v1842_v29  ;;  %v2603_v29 = vld [vmem:[%s3525_s16] sm:$0xff] }
 0x680   : > { %v1851_v46 = vrot.slane %v1843_v52, %v3630_v55  ;;  %v1858_v49 = vrot.slane %v1844_v31, %v3630_v55  ;;  %v1867_v36 = vrot.slane %v1859_v44, %v3630_v55  ;;  %v1874_v53 = vrot.slane %v1860_v45, %v3630_v55  ;;  %v3393_v14 = vpop.eup %3392  ;;  %v2604_v52 = vld [vmem:[%s3525_s16 + $0x8] sm:$0xff] }
 0x681   : > { %v2176_v19 = vmul.f32 %v3393_v14, %v3896_v15  ;;  %v2608_v31 = vpack.c.bf16 %v2604_v52, %v2603_v29 }
 0x682   : > { %v1879_v54 = vcombine.low %v1851_v46, %v1858_v49  ;;  %v3096_v56 = vcombine.high %v1851_v46, %v1858_v49  ;;  %v1895_v41 = vcombine.low %v1867_v36, %v1874_v53  ;;  %v3097_v57 = vcombine.high %v1867_v36, %v1874_v53 }
 0x683   : > { %v2180_v27 = vpack.c.bf16 %v2176_v19, %v2176_v19 }
 0x684   : > { %v1886_v58 = vrot.slane %v1879_v54, %v3628_v48  ;;  %v1894_v35 = vrot.slane %v3096_v56, %v3628_v48  ;;  %v1902_v62 = vrot.slane %v1895_v41, %v3628_v48  ;;  %v1910_v34 = vrot.slane %v3097_v57, %v3628_v48 }
 0x686   : > { %v1911_v3 = vcombine.low %v1886_v58, %v1894_v35  ;;  %v1927_v5 = vcombine.low %v1902_v62, %v1910_v34  ;;  %v1912_v6 = vcombine.high %v1886_v58, %v1894_v35  ;;  %v1928_v7 = vcombine.high %v1902_v62, %v1910_v34 }
 0x688   : > { %v1919_v8 = vrot.slane %v1911_v3, %v3630_v55  ;;  %v1935_v10 = vrot.slane %v1927_v5, %v3630_v55  ;;  %v1926_v11 = vrot.slane %v1912_v6, %v3630_v55  ;;  %v1942_v12 = vrot.slane %v1928_v7, %v3630_v55 }
 0x68a   : > { %v1943_v16 = vcombine.low %v1919_v8, %v1935_v10  ;;  %v1944_v32 = vcombine.high %v1919_v8, %v1935_v10  ;;  %v1945_v9 = vcombine.low %v1926_v11, %v1942_v12  ;;  %v1946_v42 = vcombine.high %v1926_v11, %v1942_v12 }
 0x68c   : > { %v1947_v20 = vpack.c.bf16 %v1943_v16, %v1943_v16  ;;  %v1948_v23 = vpack.c.bf16 %v1944_v32, %v1944_v32  ;;  %v1949_v24 = vpack.c.bf16 %v1945_v9, %v1945_v9  ;;  %v1950_v25 = vpack.c.bf16 %v1946_v42, %v1946_v42  ;;  %v2605_v42 = vld [vmem:[%s3525_s16 + $0x10] sm:$0xff]  ;;  %s3455_s16 = smov 16  }
 0x68e   : > { %v2187_v30 = vsel %vm1240_vm4, %v1947_v20, 0  ;;  %v2233_v50 = vsel %vm1240_vm4, %v1948_v23, 0  ;;  %v2279_v13 = vsel %vm1240_vm4, %v1949_v24, 0  ;;  %v2325_v15 = vsel %vm1240_vm4, %v1950_v25, 0 }
 0x68f   : > { %3263 = vmatpush3.bf16.msra.mxu0 %v2187_v30  ;;  %3269 = vmatpush3.bf16.msra.mxu1 %v2233_v50  ;;  %v2609_v50 = vpack.c.bf16 %v2606_v18, %v2605_v42 }
 0x690   : > { %3274 = vmatprep.subr.bf16.mxu0 %v3446_v4  ;;  %3280 = vmatprep.subr.bf16.mxu1 %v3446_v4 }
 0x692   : > { %3265 = vmatmul.mubr.msk.bf16.vlgmr.msra.gmra.mrb[24].mxu0 %vm1004_vm3, %v2179_v26  ;;  %3271 = vmatmul.mubr.msk.bf16.vlgmr.msra.gmra.mrb[28].mxu1 %vm1004_vm3, %v2180_v27 }
 0x693   : > { %3275 = vmatpush3.bf16.msra.mxu0 %v2279_v13  ;;  %3281 = vmatpush3.bf16.msra.mxu1 %v2325_v15  ;;  %v2617_v13 = vsel %vm478_vm1, %v2609_v50, 0  ;;  %v2726_v50 = vld [vmem:[%s3535_s23 + $0x30] sm:$0xff] }
 0x694   : > { %3282 = vmatprep.mubr.msk.bf16.mxu1 %vm3447_vm2, %v3446_v4  ;;  %3276 = vmatprep.mubr.msk.bf16.mxu0 %vm3447_vm2, %v3446_v4 }
 0x695   : > { %3286 = vmatprep.subr.bf16.mxu0 %v3446_v4  ;;  %3294 = vmatprep.subr.bf16.mxu1 %v3446_v4 }
 0x6a6   : > { %v2170_v28 = vpop.xlane.xlu1 %2169 }
 0x6a7   : > { %3394 = vrcp.f32 %v2170_v28 }
 0x6aa   : > { %v2167_v21 = vpop.xlane.xlu0 %2166 }
 0x6ab   : > { %3396 = vrcp.f32 %v2167_v21 }
 0x6b1   : > { %v3395_v37 = vpop.eup %3394 }
 0x6b2   : > { %v2178_v38 = vmul.f32 %v3395_v37, %v3906_v22  ;;  %v2614_v22 = vsel %vm478_vm1, %v2608_v31, 0 }
 0x6b4   : > { %v2182_v39 = vpack.c.bf16 %v2178_v38, %v2178_v38 }
 0x6b5   : > { %v3397_v40 = vpop.eup %3396 }
 0x6b6   : > { %v2177_v33 = vmul.f32 %v3397_v40, %v3910_v51  ;;  %3283 = vmatmul.mubr.msk.bf16.vlgmr.msra.gmra.mrb[32].mxu1 %vm1004_vm3, %v2182_v39 }
 0x6b7   : > { %3310 = vmatprep.mubr.msk.bf16.mxu1 %vm3447_vm2, %v3446_v4 }
 0x6b8   : > { %v2181_v43 = vpack.c.bf16 %v2177_v33, %v2177_v33 }
 0x6ba   : > { %3277 = vmatmul.mubr.msk.bf16.vlgmr.msra.gmra.mrb[28].mxu0 %vm1004_vm3, %v2181_v43 }
 0x6bb   : > { %3290 = vmatprep.mubr.msk.bf16.mxu0 %vm3447_vm2, %v3446_v4  ;;  %3287 = vmatpush3.bf16.xpose.msra.mxu0 %v2614_v22 }
 0x6bc   : > { %3288 = vmatprep.subr.bf16.mxu0 %v3446_v4 }
 0x6c3   : > { %3289 = vmatpush3.bf16.xpose.msra.mxu0 %v2617_v13 }
 0x6c4   : > { %3314 = vmatprep.subr.bf16.mxu0 %v3446_v4 }
 0x765   : > { %v2223_v51 = vpop.f32.mrb[24].mxu0  ;;  %v2269_v44 = vpop.f32.mrb[28].mxu1 }
 0x766   : > { %v3266_v45 = vpop.f32.mrb[25].mxu0  ;;  %v3272_v46 = vpop.f32.mrb[29].mxu1 }
 0x767   : > { %v2226_v49 = vpop.f32.mrb[26].mxu0  ;;  %v2272_v36 = vpop.f32.mrb[30].mxu1 }
 0x768   : > { %v3267_v53 = vpop.f32.mrb[27].mxu0  ;;  %v3273_v54 = vpop.f32.mrb[31].mxu1 }
 0x789   : > { %v2361_v56 = vpop.f32.mrb[32].mxu1 }
 0x78a   : > { %v2383_v41 = vcombine.low %v2269_v44, %v2361_v56  ;;  %v2384_v57 = vcombine.high %v2269_v44, %v2361_v56  ;;  %v3284_v58 = vpop.f32.mrb[33].mxu1 }
 0x78b   : > { %v2364_v35 = vpop.f32.mrb[34].mxu1 }
 0x78c   : > { %v3285_v62 = vpop.f32.mrb[35].mxu1  ;;  %v2391_v17 = vrot.slane %v2383_v41, %v3628_v48  ;;  %v2398_v8 = vrot.slane %v2384_v57, %v3628_v48 }
 0x78d   : > { %v2315_v34 = vpop.f32.mrb[28].mxu0 }
 0x78e   : > { %v2367_v3 = vcombine.low %v2223_v51, %v2315_v34  ;;  %v2368_v5 = vcombine.high %v2223_v51, %v2315_v34  ;;  %v3278_v6 = vpop.f32.mrb[29].mxu0 }
 0x78f   : > { %v2318_v7 = vpop.f32.mrb[30].mxu0  ;;  %v3407_v6 = vld [vmem:[#allocation2 + $0x8] sm:$0xff] }
 0x790   : > { %v2375_v10 = vrot.slane %v2367_v3, %v3628_v48  ;;  %v2382_v11 = vrot.slane %v2368_v5, %v3628_v48  ;;  %v3279_v12 = vpop.f32.mrb[31].mxu0 }
 0x791   : > { %v2721_v12 = vld [vmem:[%s3535_s23 + $0x8] sm:$0xff] }
 0x792   : > { %v2399_v14 = vcombine.low %v2375_v10, %v2391_v17  ;;  %v2400_v16 = vcombine.high %v2375_v10, %v2391_v17  ;;  %v2415_v32 = vcombine.low %v2382_v11, %v2398_v8  ;;  %v2416_v9 = vcombine.high %v2382_v11, %v2398_v8  ;;  %v2720_v11 = vld [vmem:[%s3535_s23] sm:$0xff] }
 0x794   : > { %v2407_v19 = vrot.slane %v2399_v14, %v3630_v55  ;;  %v2414_v20 = vrot.slane %v2400_v16, %v3630_v55  ;;  %v2423_v23 = vrot.slane %v2415_v32, %v3630_v55  ;;  %v2430_v30 = vrot.slane %v2416_v9, %v3630_v55  ;;  %v2722_v16 = vld [vmem:[%s3535_s23 + $0x10] sm:$0xff]  ;;  %v2723_v32 = vld [vmem:[%s3535_s23 + $0x18] sm:$0xff] }
 0x795   : > { %v2737_v14 = vpack.c.bf16 %v2721_v12, %v2720_v11  ;;  %v2738_v42 = vpack.c.bf16 %v2723_v32, %v2722_v16 }
 0x796   : > { %v2520_v24 = vcombine.low %v2407_v19, %v2414_v20  ;;  %v3108_v25 = vcombine.high %v2407_v19, %v2414_v20  ;;  %v2536_v26 = vcombine.low %v2423_v23, %v2430_v30  ;;  %v3109_v27 = vcombine.high %v2423_v23, %v2430_v30  ;;  %v2724_v19 = vld [vmem:[%s3535_s23 + $0x20] sm:$0xff]  ;;  %v2725_v20 = vld [vmem:[%s3535_s23 + $0x28] sm:$0xff] }
 0x797   : > { %v2749_v9 = vsel %vm478_vm1, %v2737_v14, 0  ;;  %v2752_v18 = vsel %vm478_vm1, %v2738_v42, 0  ;;  %v2739_v23 = vpack.c.bf16 %v2725_v20, %v2724_v19 }
 0x798   : > { %v2527_v15 = vrot.slane %v2520_v24, %v3628_v48  ;;  %v2535_v28 = vrot.slane %v3108_v25, %v3628_v48  ;;  %v2543_v21 = vrot.slane %v2536_v26, %v3628_v48  ;;  %v2551_v37 = vrot.slane %v3109_v27, %v3628_v48  ;;  %3295 = vmatpush3.bf16.xpose.msra.mxu1 %v2749_v9  ;;  %v2727_v24 = vld [vmem:[%s3535_s23 + $0x38] sm:$0xff] }
 0x799   : > { %3296 = vmatprep.subr.bf16.mxu1 %v3446_v4  ;;  %v2755_v30 = vsel %vm478_vm1, %v2739_v23, 0  ;;  %v2740_v25 = vpack.c.bf16 %v2727_v24, %v2726_v50  ;;  %v2660_v50 = vld [vmem:[%s434_s12] sm:$0xff] }
 0x79a   : > { %v2553_v38 = vcombine.high %v2527_v15, %v2535_v28  ;;  %v2569_v39 = vcombine.high %v2543_v21, %v2551_v37  ;;  %v2552_v40 = vcombine.low %v2527_v15, %v2535_v28  ;;  %v2568_v33 = vcombine.low %v2543_v21, %v2551_v37 }
 0x79b   : > { %v2758_v26 = vsel %vm478_vm1, %v2740_v25, 0 }
 0x79c   : > { %v2567_v43 = vrot.slane %v2553_v38, %v3630_v55  ;;  %v2583_v29 = vrot.slane %v2569_v39, %v3630_v55  ;;  %v2560_v52 = vrot.slane %v2552_v40, %v3630_v55  ;;  %v2576_v31 = vrot.slane %v2568_v33, %v3630_v55 }
 0x79e   : > { %v2586_v22 = vcombine.low %v2567_v43, %v2583_v29  ;;  %v2585_v51 = vcombine.high %v2560_v52, %v2576_v31  ;;  %v2584_v44 = vcombine.low %v2560_v52, %v2576_v31  ;;  %v2587_v45 = vcombine.high %v2567_v43, %v2583_v29 }
 0x7a0   : > { %v3356_v48 = vpack.i.bf16 %v2586_v22, %v2501_v63  ;;  %v3351_v46 = vpack.i.bf16 %v2585_v51, %v2500_v1  ;;  %v3361_v49 = vpack.i.bf16 %v2587_v45, %v2502_v2  ;;  %3297 = vmatpush3.bf16.xpose.msra.mxu1 %v2752_v18 }
 0x7a1   : > { %3298 = vmatprep.subr.bf16.mxu1 %v3446_v4 }
 0x7a2   : > { %3357 = vrot.lane.b32.xlu1 %v3356_v48, %s3455_s16  ;;  %3352 = vrot.lane.b32.xlu0 %v3351_v46, %s3456_s13 }
 0x7a6   : > { %3362 = vrot.lane.b32.xlu0 %v3361_v49, %s3457_s22 }
 0x7a8   : > { %3299 = vmatpush3.bf16.xpose.msra.mxu1 %v2755_v30 }
 0x7a9   : > { %3300 = vmatprep.subr.bf16.mxu1 %v3446_v4 }
 0x7b0   : > { %3301 = vmatpush3.bf16.xpose.msra.mxu1 %v2758_v26 }
 0x7b1   : > { %3302 = vmatprep.subr.bf16.mxu1 %v3446_v4 }
 0x814   : > { %v3358_v55 = vpop.permute.xlu1 %3357  ;;  %v3353_v36 = vpop.permute.xlu0 %3352 }
 0x815   : > { %v3355_v53 = vunpack.i.h.bf16 %v3353_v36  ;;  %v3354_v54 = vunpack.i.l.bf16 %v3353_v36  ;;  %v3360_v63 = vunpack.i.h.bf16 %v3358_v55  ;;  %v3359_v56 = vunpack.i.l.bf16 %v3358_v55  ;;  %v2728_v36 = vld [vmem:[%s3535_s23 + $0x40] sm:$0xff] }
 0x817   : > { %v2515_v1 = vsel %vm1004_vm3, %v2499_v0, %v3354_v54  ;;  %v2600_v47 = vsel %vm1004_vm3, %v2584_v44, %v3355_v53  ;;  %v2729_v53 = vld [vmem:[%s3535_s23 + $0x48] sm:$0xff] }
 0x818   : > { %v3363_v59 = vpop.permute.xlu0 %3362  ;;  %v2517_v57 = vsel %vm2516_vm5, %v2515_v1, %v3359_v56  ;;  %v2601_v58 = vsel %vm2516_vm5, %v2600_v47, %v3360_v63  ;;  %v2741_v54 = vpack.c.bf16 %v2729_v53, %v2728_v36  ;;  %v2730_v56 = vld [vmem:[%s3535_s23 + $0x50] sm:$0xff]  ;;  %v2731_v1 = vld [vmem:[%s3535_s23 + $0x58] sm:$0xff] }
 0x819   : > { %v3365_v2 = vunpack.i.h.bf16 %v3363_v59  ;;  %v3364_v41 = vunpack.i.l.bf16 %v3363_v59  ;;  %v2742_v47 = vpack.c.bf16 %v2731_v1, %v2730_v56 }
 0x81a   : > { %v2761_v63 = vsel %vm478_vm1, %v2741_v54, 0 }
 0x81b   : > { %v2519_v35 = vsel %vm2518_vm6, %v2517_v57, %v3364_v41  ;;  %v2602_v62 = vsel %vm2518_vm6, %v2601_v58, %v3365_v2  ;;  %3303 = vmatpush3.bf16.xpose.msra.mxu1 %v2761_v63  ;;  %v2764_v59 = vsel %vm478_vm1, %v2742_v47, 0  ;;  %v2732_v2 = vld [vmem:[%s3535_s23 + $0x60] sm:$0xff]  ;;  %v2733_v41 = vld [vmem:[%s3535_s23 + $0x68] sm:$0xff]  ;;  %v2734_v58 = vld [vmem:[%s3535_s23 + $0x70] sm:$0xff] }
 0x81c   : > { %v2607_v34 = vpack.c.bf16 %v2602_v62, %v2519_v35  ;;  %3304 = vmatprep.subr.bf16.mxu1 %v3446_v4  ;;  %v2743_v57 = vpack.c.bf16 %v2733_v41, %v2732_v2  ;;  %v2735_v35 = vld [vmem:[%s3535_s23 + $0x78] sm:$0xff] }
 0x81e   : > { %3291 = vmatmul.mubr.msk.bf16.vlgmr.msra.gmra.mrb[32].mxu0 %vm478_vm1, %v2607_v34  ;;  %v2767_v62 = vsel %vm478_vm1, %v2743_v57, 0  ;;  %v2744_v34 = vpack.c.bf16 %v2735_v35, %v2734_v58 }
 0x81f   : > { %3318 = vmatprep.mubr.msk.bf16.mxu0 %vm3447_vm2, %v3446_v4 }
 0x823   : > { %3305 = vmatpush3.bf16.xpose.msra.mxu1 %v2764_v59 }
 0x824   : > { %3306 = vmatprep.subr.bf16.mxu1 %v3446_v4 }
 0x82b   : > { %3307 = vmatpush3.bf16.xpose.msra.mxu1 %v2767_v62 }
 0x82c   : > { %3308 = vmatprep.subr.bf16.mxu1 %v3446_v4 }
 0x8f1   : > { %v2653_v60 = vpop.f32.mrb[32].mxu0 }
 0x8f2   : > { %v2662_v0 = vadd.f32 %v3406_v61, %v2653_v60  ;;  %v3292_v3 = vpop.f32.mrb[33].mxu0  ;;  %v2770_v60 = vsel %vm478_vm1, %v2744_v34, 0  ;;  %v2815_v61 = vld [vmem:[%s3540_s26] sm:$0xff] }
 0x8f3   : > { %v2656_v5 = vpop.f32.mrb[34].mxu0  ;;  %3309 = vmatpush3.bf16.xpose.msra.mxu1 %v2770_v60 }
 0x8f4   : > { %v2663_v7 = vadd.f32 %v3407_v6, %v2656_v5  ;;  %v3293_v17 = vpop.f32.mrb[35].mxu0  ;;  %v2664_v8 = vsel %vm478_vm1, %v2662_v0, 0.0 }
 0x8f5   : > { %2665 = vadd.xlane.f32.xlu1 %v2664_v8 }
 0x8f6   : > { %v2667_v10 = vsel %vm478_vm1, %v2663_v7, 0.0 }
 0x8f7   : > { %2668 = vadd.xlane.f32.xlu0 %v2667_v10 }
 0x982   : > { %v2666_v27 = vpop.xlane.xlu1 %2665 }
 0x983   : > { %v2670_v13 = vrot.slane %v2666_v27, 4 }
 0x984   : > { %v2669_v15 = vpop.xlane.xlu0 %2668 }
 0x985   : > { %v2671_v28 = vadd.f32 %v2670_v13, %v2666_v27  ;;  %v2676_v21 = vrot.slane %v2669_v15, 4  ;;  %v2661_v13 = vld [vmem:[%s438_s17] sm:$0xff] }
 0x987   : > { %v2672_v37 = vrot.slane %v2671_v28, 2  ;;  %v2677_v38 = vadd.f32 %v2676_v21, %v2669_v15 }
 0x989   : > { %v2673_v39 = vadd.f32 %v2672_v37, %v2671_v28  ;;  %v2678_v40 = vrot.slane %v2677_v38, 2 }
 0x98b   : > { %v2674_v33 = vrot.slane %v2673_v39, 1  ;;  %v2679_v43 = vadd.f32 %v2678_v40, %v2677_v38  ;;  %v2817_v38 = vld [vmem:[%s3540_s26 + $0x10] sm:$0xff] }
 0x98d   : > { %v2675_v29 = vadd.f32 %v2674_v33, %v2673_v39  ;;  %v2680_v52 = vrot.slane %v2679_v43, 1  ;;  %v2818_v39 = vld [vmem:[%s3540_s26 + $0x18] sm:$0xff] }
 0x98e   : > { %v2821_v40 = vpack.c.bf16 %v2818_v39, %v2817_v38 }
 0x98f   : > { %v2683_v31 = vmul.f32 0.00390625, %v2675_v29  ;;  %v2681_v22 = vadd.f32 %v2680_v52, %v2679_v43 }
 0x991   : > { %v2684_v51 = vmul.f32 0.00390625, %v2681_v22  ;;  %v2685_v44 = vsub.f32 %v2662_v0, %v2683_v31  ;;  %v2816_v0 = vld [vmem:[%s3540_s26 + $0x8] sm:$0xff] }
 0x992   : > { %v2820_v3 = vpack.c.bf16 %v2816_v0, %v2815_v61 }
 0x993   : > { %v2687_v45 = vmul.f32 %v2685_v44, %v2685_v44  ;;  %v2686_v48 = vsub.f32 %v2663_v7, %v2684_v51 }
 0x994   : > { %3315 = vmatpush3.bf16.xpose.msra.mxu0 %v2820_v3 }
 0x995   : > { %v2689_v46 = vsel %vm478_vm1, %v2687_v45, 0.0  ;;  %v2688_v49 = vmul.f32 %v2686_v48, %v2686_v48  ;;  %3316 = vmatprep.subr.bf16.mxu0 %v3446_v4 }
 0x996   : > { %2690 = vadd.xlane.f32.xlu0 %v2689_v46 }
 0x997   : > { %v2692_v55 = vsel %vm478_vm1, %v2688_v49, 0.0 }
 0x998   : > { %2693 = vadd.xlane.f32.xlu1 %v2692_v55 }
 0x99c   : > { %3317 = vmatpush3.bf16.xpose.msra.mxu0 %v2821_v40 }
 0xa23   : > { %v2691_v5 = vpop.xlane.xlu0 %2690 }
 0xa24   : > { %v2695_v6 = vrot.slane %v2691_v5, 4 }
 0xa25   : > { %v2694_v7 = vpop.xlane.xlu1 %2693 }
 0xa26   : > { %v2696_v17 = vadd.f32 %v2695_v6, %v2691_v5  ;;  %v2701_v8 = vrot.slane %v2694_v7, 4 }
 0xa28   : > { %v2697_v10 = vrot.slane %v2696_v17, 2  ;;  %v2702_v11 = vadd.f32 %v2701_v8, %v2694_v7 }
 0xa2a   : > { %v2698_v12 = vadd.f32 %v2697_v10, %v2696_v17  ;;  %v2703_v14 = vrot.slane %v2702_v11, 2 }
 0xa2c   : > { %v2699_v16 = vrot.slane %v2698_v12, 1  ;;  %v2704_v32 = vadd.f32 %v2703_v14, %v2702_v11 }
 0xa2e   : > { %v2700_v9 = vadd.f32 %v2699_v16, %v2698_v12  ;;  %v2705_v42 = vrot.slane %v2704_v32, 1 }
 0xa30   : > { %v2708_v18 = vmul.f32 0.003921569, %v2700_v9  ;;  %v2706_v19 = vadd.f32 %v2705_v42, %v2704_v32 }
 0xa32   : > { %v2710_v20 = vadd.f32 1e-05, %v2708_v18  ;;  %v2709_v23 = vmul.f32 0.003921569, %v2706_v19 }
 0xa34   : > { %3398 = vrsqrt.f32 %v2710_v20  ;;  %v2711_v4 = vadd.f32 1e-05, %v2709_v23 }
 0xa36   : > { %3400 = vrsqrt.f32 %v2711_v4 }
 0xa3e   : > { %v3399_v30 = vpop.eup %3398 }
 0xa3f   : > { %v2714_v24 = vmul.f32 %v3399_v30, %v2685_v44 }
 0xa40   : > { %v3401_v25 = vpop.eup %3400 }
 0xa41   : > { %v2715_v26 = vmul.f32 %v3401_v25, %v2686_v48  ;;  %v2716_v27 = vmul.f32 %v2714_v24, %v2660_v50 }
 0xa43   : > { %v2717_v15 = vmul.f32 %v2715_v26, %v2660_v50  ;;  %v2718_v28 = vadd.f32 %v2716_v27, %v2661_v13 }
 0xa45   : > { %v2719_v21 = vadd.f32 %v2717_v15, %v2661_v13  ;;  %v2863_v13 = vld [vmem:[%s442_s21] sm:$0xff] }
 0xa47   : > { %v2736_v37 = vpack.c.bf16 %v2719_v21, %v2718_v28 }
 0xa49   : > { %3311 = vmatmul.mubr.msk.bf16.vlgmr.msra.gmra.mrb[36].mxu1 %vm478_vm1, %v2736_v37 }
 0xb1c   : > { %v2806_v33 = vpop.f32.mrb[36].mxu1 }
 0xb1d   : > { %v3312_v43 = vpop.f32.mrb[37].mxu1  ;;  %v2813_v52 = vmax.f32 %v2806_v33, 0.0 }
 0xb1e   : > { %v2809_v29 = vpop.f32.mrb[38].mxu1 }
 0xb1f   : > { %v2814_v31 = vmax.f32 %v2809_v29, 0.0  ;;  %v3313_v22 = vpop.f32.mrb[39].mxu1 }
 0xb21   : > { %v2819_v51 = vpack.c.bf16 %v2814_v31, %v2813_v52 }
 0xb23   : > { %3319 = vmatmul.mubr.bf16.vlgmr.msra.gmra.mrb[36].mxu0 %v2819_v51 }
 0xbf6   : > { %v2856_v44 = vpop.f32.mrb[36].mxu0 }
 0xbf7   : > { %v2865_v45 = vadd.f32 %v2856_v44, %v2718_v28  ;;  %v3320_v48 = vpop.f32.mrb[37].mxu0 }
 0xbf8   : > { %v2859_v46 = vpop.f32.mrb[38].mxu0 }
 0xbf9   : > { %v2866_v49 = vadd.f32 %v2859_v46, %v2719_v21  ;;  %v3321_v55 = vpop.f32.mrb[39].mxu0  ;;  %v2867_v36 = vsel %vm478_vm1, %v2865_v45, 0.0  ;;  %v2864_v21 = vld [vmem:[%s446_s11] sm:$0xff] }
 0xbfa   : > { %2868 = vadd.xlane.f32.xlu0 %v2867_v36 }
 0xbfb   : > { %v2870_v53 = vsel %vm478_vm1, %v2866_v49, 0.0 }
 0xbfc   : > { %2871 = vadd.xlane.f32.xlu1 %v2870_v53 }
 0xc87   : > { %v2869_v54 = vpop.xlane.xlu0 %2868 }
 0xc88   : > { %v2873_v63 = vrot.slane %v2869_v54, 4 }
 0xc89   : > { %v2872_v56 = vpop.xlane.xlu1 %2871 }
 0xc8a   : > { %v2874_v1 = vadd.f32 %v2873_v63, %v2869_v54  ;;  %v2879_v47 = vrot.slane %v2872_v56, 4 }
 0xc8c   : > { %v2875_v59 = vrot.slane %v2874_v1, 2  ;;  %v2880_v2 = vadd.f32 %v2879_v47, %v2872_v56 }
 0xc8e   : > { %v2876_v41 = vadd.f32 %v2875_v59, %v2874_v1  ;;  %v2881_v57 = vrot.slane %v2880_v2, 2 }
 0xc90   : > { %v2877_v58 = vrot.slane %v2876_v41, 1  ;;  %v2882_v35 = vadd.f32 %v2881_v57, %v2880_v2 }
 0xc92   : > { %v2878_v62 = vadd.f32 %v2877_v58, %v2876_v41  ;;  %v2883_v34 = vrot.slane %v2882_v35, 1 }
 0xc94   : > { %v2885_v60 = vmul.f32 0.00390625, %v2878_v62  ;;  %v2884_v61 = vadd.f32 %v2883_v34, %v2882_v35 }
 0xc96   : > { %v2886_v0 = vmul.f32 0.00390625, %v2884_v61  ;;  %v2887_v3 = vsub.f32 %v2865_v45, %v2885_v60 }
 0xc98   : > { %v2889_v5 = vmul.f32 %v2887_v3, %v2887_v3  ;;  %v2888_v6 = vsub.f32 %v2866_v49, %v2886_v0 }
 0xc9a   : > { %v2891_v7 = vsel %vm478_vm1, %v2889_v5, 0.0  ;;  %v2890_v17 = vmul.f32 %v2888_v6, %v2888_v6 }
 0xc9b   : > { %2892 = vadd.xlane.f32.xlu0 %v2891_v7 }
 0xc9c   : > { %v2894_v8 = vsel %vm478_vm1, %v2890_v17, 0.0 }
 0xc9d   : > { %2895 = vadd.xlane.f32.xlu1 %v2894_v8 }
 0xd28   : > { %v2893_v10 = vpop.xlane.xlu0 %2892 }
 0xd29   : > { %v2897_v11 = vrot.slane %v2893_v10, 4 }
 0xd2a   : > { %v2896_v12 = vpop.xlane.xlu1 %2895 }
 0xd2b   : > { %v2898_v14 = vadd.f32 %v2897_v11, %v2893_v10  ;;  %v2903_v16 = vrot.slane %v2896_v12, 4 }
 0xd2d   : > { %v2899_v32 = vrot.slane %v2898_v14, 2  ;;  %v2904_v9 = vadd.f32 %v2903_v16, %v2896_v12 }
 0xd2f   : > { %v2900_v42 = vadd.f32 %v2899_v32, %v2898_v14  ;;  %v2905_v18 = vrot.slane %v2904_v9, 2 }
 0xd31   : > { %v2901_v19 = vrot.slane %v2900_v42, 1  ;;  %v2906_v20 = vadd.f32 %v2905_v18, %v2904_v9 }
 0xd33   : > { %v2902_v23 = vadd.f32 %v2901_v19, %v2900_v42  ;;  %v2907_v4 = vrot.slane %v2906_v20, 1 }
 0xd35   : > { %v2909_v30 = vmul.f32 0.003921569, %v2902_v23  ;;  %v2908_v50 = vadd.f32 %v2907_v4, %v2906_v20 }
 0xd37   : > { %v2911_v24 = vadd.f32 1e-05, %v2909_v30  ;;  %v2910_v25 = vmul.f32 0.003921569, %v2908_v50 }
 0xd39   : > { %3402 = vrsqrt.f32 %v2911_v24  ;;  %v2912_v26 = vadd.f32 1e-05, %v2910_v25 }
 0xd3b   : > { %3404 = vrsqrt.f32 %v2912_v26 }
 0xd43   : > { %v3403_v27 = vpop.eup %3402 }
 0xd44   : > { %v2915_v15 = vmul.f32 %v3403_v27, %v2887_v3 }
 0xd45   : > { %v3405_v28 = vpop.eup %3404 }
 0xd46   : > { %v2917_v37 = vmul.f32 %v2915_v15, %v2863_v13  ;;  %v2916_v38 = vmul.f32 %v3405_v28, %v2888_v6  ;;  %2926 = sbr.rel (%p3112_p5) target bundleno = 3405 (0xd4d), region = 64 }
 0xd48   : > { %v2919_v39 = vadd.f32 %v2917_v37, %v2864_v21  ;;  %v2918_v40 = vmul.f32 %v2916_v38, %v2863_v13 }
 0xd4a   : > { %2921 = vst.msk [vmem:[#allocation2] sm:$0xff] %vm478_vm1, %v2919_v39  ;;  %v2920_v33 = vadd.f32 %v2918_v40, %v2864_v21  ;;  %2927 = vst.msk [vmem:[#allocation3] sm:$0xff] (!%p3112_p5), %vm478_vm1, %v2919_v39 }
 0xd4c   : > { %2922 = vst.msk [vmem:[#allocation2 + $0x8] sm:$0xff] %vm478_vm1, %v2920_v33  ;;  %2928 = vst.msk [vmem:[#allocation3 + $0x8] sm:$0xff] (!%p3112_p5), %vm478_vm1, %v2920_v33 }
 0xd4d PF: > { %p3327_p6 = scmp.eq.s32.totalorder %s3516_s10, 1  ;;  %s3458_s27 = smov [#allocation3]  }
 0xd4e   : > { %s2935_s21 = sshll.u32 %s3458_s27, 4  ;;  %s2936_s21 = int_to_ptr.vmem [resolvable:$true] %s2935_s21 }
 0xd4f   : > { %s3408_s11 = scalar_lea.vmem %s2936_s21, 256  ;;  %p3415_p10 = scmp.lt.s32.totalorder %s2936_s21, %s2936_s21 }
 0xd50   : > { %p3409_p7 = scmp.ne.s32.totalorder %s2936_s21, %s3408_s11  ;;  %p3416_p11 = scmp.lt.s32.totalorder %s3408_s11, %s3408_s11 }
 0xd52   : > { %p3410_p8 = pnand %p3409_p7, %p3327_p6  ;;  %p3417_p12 = por %p3416_p11, %p3415_p10 }
 0xd54   : > { %p3411_p9 = pneg %p3410_p8 }
 0xd56   : > { %p3418_p13 = pnand %p3417_p12, %p3411_p9 }
 0xd58   : > { %3421 = shalt.err (!%p3418_p13)
}
 0xd59   : > { %s3422_s15 = scalar_lea.hbm %s4102_s9, 256 }
 0xd5a   : > { %p3423_p0 = scmp.ne.s32.totalorder %s4102_s9, %s3422_s15  ;;  %p3428_p3 = scmp.lt.u32.totalorder %s3422_s15, %s4102_s9 }
 0xd5c   : > { %p3424_p1 = pnand %p3423_p0, %p3327_p6 }
 0xd5e   : > { %p3425_p2 = pneg %p3424_p1 }
 0xd60   : > { %p3430_p4 = pnand %p3428_p3, %p3425_p2 }
 0xd62   : > { %3433 = shalt.err (!%p3430_p4)
}
 0xd63   : > { %s3459_s23 = smov 128  }
 0xd64   : > { %3324 = dma.vmem_to_hbm [thread:$0]  (%p3327_p6), %s2936_s21, 256, %s4102_s9, [#allocation4], %s3459_s23, %s3459_s23, %s3456_s13  }
 0xd65   : > { %3439 = dma.done.wait (%p3327_p6), [#allocation4], 256  }
 0xd66   : > { %3441 = vsyncadd (%p3327_p6), [#allocation4], 4294967040 }
 0xd67 PF: > { %s20_s30 = sadd.s32 1, %s3444_s30  }
 0xd68   : > { %p17_p5 = scmp.ge.s32.totalorder %s20_s30, 4  }
 0xd6a   :  { %19 = sbr.rel (!%p17_p5) target bundleno = 1 (0x1), region = 112 }
 0xd71   :  { %2951 = vsyncpa [#allocation4], 1 }
 0xd72   :  { %2953 = vsyncpa [#allocation4 + $0x1], 1 }

</bundles_post_ra>
